<compile_context>
chip_gen: v7x
topology: tpu7x:2x2x1
jax: 0.10.0
libtpu: 0.0.40
codegen_flags: <defaults>
</compile_context>

<pallas_src>
import jax
import jax.numpy as jnp
import numpy as np
from jax.experimental import pallas as pl
from jax.experimental.pallas import tpu as pltpu


def lstm_attn_kernel(
    x_ref,        # (seq_len, bt, in)   input_seq (one batch tile)
    h0_ref,       # (bt, H)             LSTM initial hidden
    c0_ref,       # (bt, H)             LSTM initial cell
    w_ih_ref,     # (in, 4H)            fused LSTM input weights, gates [i,f,o,g]
    w_hh_ref,     # (H, 4H)             fused LSTM hidden weights
    b_lstm_ref,   # (1, 4H)             bias_ih + bias_hh
    wd_ih_ref,    # (out, H)            decoder RNN input weights (transposed)
    wd_hh_ref,    # (H, H)              decoder RNN hidden weights (transposed)
    b_dec_ref,    # (1, H)              decoder RNN bias (ih + hh)
    w_lin_ref,    # (H, out)            output Linear weight (transposed)
    b_lin_ref,    # (1, out)            output Linear bias
    out_ref,      # (pred_len, bt, out) predictions
    enc_ref,      # VMEM scratch (seq_len - 1, bt, H): encoder outputs
):
    seq_enc, bt, H = enc_ref.shape
    pred_len, _, out_size = out_ref.shape
    in_size = x_ref.shape[-1]

    def unrolled(n, body, carry):
        # Short static trip counts -> full Python unroll (LLO scheduler sees
        # across timesteps).  Fallback keeps compile time bounded if reused
        # with long sequences.
        if n <= 32:
            for t in range(n):
                carry = body(t, carry)
            return carry
        return jax.lax.fori_loop(0, n, body, carry, unroll=4)

    # ---------------- encoder LSTM over input_seq[:-1] ----------------
    w_ih = w_ih_ref[...]                                          # hoisted loads
    w_hh = w_hh_ref[...]
    b_lstm = jnp.broadcast_to(b_lstm_ref[...], (bt, 4 * H))       # hoisted bcast

    def enc_step(t, carry):
        h, c = carry
        x_t = x_ref[t]                                            # (bt, in)
        if in_size == 1:
            ih = x_t * w_ih                 # K=1 outer product on the VPU
        else:
            ih = jnp.dot(x_t, w_ih, preferred_element_type=jnp.float32)
        gates = ih + jnp.dot(h, w_hh, preferred_element_type=jnp.float32) + b_lstm
        sig = jax.nn.sigmoid(gates[:, :3 * H])                    # i,f,o in one pass
        g = jnp.tanh(gates[:, 3 * H:])
        i_g, f_g, o_g = sig[:, :H], sig[:, H:2 * H], sig[:, 2 * H:]
        c_new = f_g * c + i_g * g
        h_new = o_g * jnp.tanh(c_new)
        enc_ref[t] = h_new                                        # store encoder output
        return h_new, c_new

    h_enc, _ = unrolled(seq_enc, enc_step, (h0_ref[...], c0_ref[...]))

    # -------- decoder: RNN cell + dot-product attention + Linear/ReLU --------
    enc_bm = jnp.transpose(enc_ref[...], (1, 0, 2))               # (bt, S, H), once
    wd_ih = wd_ih_ref[...]
    wd_hh = wd_hh_ref[...]
    w_lin = w_lin_ref[...]
    b_dec = jnp.broadcast_to(b_dec_ref[...], (bt, H))
    b_lin = jnp.broadcast_to(b_lin_ref[...], (bt, out_size))

    def dec_step(step, carry):
        h, x_in = carry
        if out_size == 1:
            ih = x_in * wd_ih               # (bt,1)*(1,H): VPU, no MXU latency
        else:
            ih = jnp.dot(x_in, wd_ih, preferred_element_type=jnp.float32)
        h_new = jnp.tanh(
            ih + jnp.dot(h, wd_hh, preferred_element_type=jnp.float32) + b_dec)

        # dot-product attention over encoder time: batched MXU contractions
        h_q = h_new[:, None, :]                                   # (bt, 1, H)
        scores = jnp.einsum("bqh,bsh->bqs", h_q, enc_bm,
                            preferred_element_type=jnp.float32)   # (bt, 1, S)
        m = jnp.max(scores, axis=-1, keepdims=True)
        e = jnp.exp(scores - m)
        attn = e / jnp.sum(e, axis=-1, keepdims=True)             # softmax over S
        context = jnp.einsum("bqs,bsh->bqh", attn, enc_bm,
                             preferred_element_type=jnp.float32)[:, 0, :]   # (bt, H)

        pred = jnp.maximum(
            jnp.dot(context, w_lin, preferred_element_type=jnp.float32) + b_lin,
            0.0)                                                  # (bt, out)  ReLU
        # NOTE: out lane dim = out_size (1 here) -> masked store; negligible at
        # this size, keep out_size a multiple of 128 if it ever grows.
        out_ref[step] = pred
        return h_new, pred                                        # pred feeds next step

    dec_in0 = x_ref[seq_enc]            # input_seq[-1]; requires in_size == out_size
    unrolled(pred_len, dec_step, (h_enc, dec_in0))


def lstm_attn_forward(input_seq, h0, c0, params, pred_length):
    """input_seq: (seq_len, B, in); h0/c0: (B, H). Returns (pred_len, B, 1, out)."""
    seq_len, batch, in_size = input_seq.shape
    H = params["w_hh"].shape[1]
    out_size = params["w_lin"].shape[0]
    assert seq_len >= 2, "need at least one encoder step (seq_len >= 2)"
    # input_seq[-1] seeds the decoder RNN, which expects out_size features.
    assert in_size == out_size, "decoder seed requires input_size == output_size"

    def reorder(w):
        # PyTorch gate order [i, f, g, o] -> [i, f, o, g]: sigmoid gates contiguous.
        i, f, g, o = jnp.split(w, 4, axis=0)
        return jnp.concatenate([i, f, o, g], axis=0)

    # fused, transposed weights for `x @ W` in the kernel
    w_ih_all = reorder(params["w_ih"]).T                              # (in, 4H)
    w_hh_all = reorder(params["w_hh"]).T                              # (H, 4H)
    b_lstm = reorder(params["b_ih"] + params["b_hh"]).reshape(1, 4 * H)
    wd_ih_t = params["wd_ih"].T                                       # (out, H)
    wd_hh_t = params["wd_hh"].T                                       # (H, H)
    b_dec = (params["bd_ih"] + params["bd_hh"]).reshape(1, H)
    w_lin_t = params["w_lin"].T                                       # (H, out)
    b_lin = params["b_lin"].reshape(1, out_size)

    # Batch tile for the "parallel" grid axis: must be the full batch or a
    # multiple of 8 (sublane).  At production sizes shrink this (and set
    # pltpu.CompilerParams(vmem_limit_bytes=...)) so the per-tile enc scratch
    # (seq_len-1)*bt*H*4 bytes + resident weights fit v7x's 64 MiB VMEM.
    if batch % 8 == 0:
        bt = min(batch, 64)
        while batch % bt:
            bt //= 2
    else:
        bt = batch
    grid = (batch // bt,)

    def full(shape):
        return pl.BlockSpec(shape, lambda b: (0,) * len(shape))

    in_specs = [
        pl.BlockSpec((seq_len, bt, in_size), lambda b: (0, b, 0)),    # x
        pl.BlockSpec((bt, H), lambda b: (b, 0)),                      # h0
        pl.BlockSpec((bt, H), lambda b: (b, 0)),                      # c0
        full((in_size, 4 * H)),                                       # w_ih fused
        full((H, 4 * H)),                                             # w_hh fused
        full((1, 4 * H)),                                             # b_lstm
        full((out_size, H)),                                          # wd_ih
        full((H, H)),                                                 # wd_hh
        full((1, H)),                                                 # b_dec
        full((H, out_size)),                                          # w_lin
        full((1, out_size)),                                          # b_lin
    ]
    out_specs = pl.BlockSpec((pred_length, bt, out_size), lambda b: (0, b, 0))

    out = pl.pallas_call(
        lstm_attn_kernel,
        out_shape=jax.ShapeDtypeStruct((pred_length, batch, out_size), jnp.float32),
        grid=grid,
        in_specs=in_specs,
        out_specs=out_specs,
        scratch_shapes=[pltpu.VMEM((seq_len - 1, bt, H), jnp.float32)],
        compiler_params=pltpu.CompilerParams(
            dimension_semantics=("parallel",)),
    )(input_seq, h0, c0, w_ih_all, w_hh_all, b_lstm,
      wd_ih_t, wd_hh_t, b_dec, w_lin_t, b_lin)

    # torch.stack of (B, 1, out) predictions -> (pred_len, B, 1, out)
    return out[:, :, None, :]


def reference_forward(input_seq, h0, c0, p, pred_length):
    """Pure-JAX mirror of the PyTorch forward (for validation)."""
    H = p["w_hh"].shape[1]
    seq_enc = input_seq.shape[0] - 1
    h, c = h0, c0
    b = p["b_ih"] + p["b_hh"]
    enc = []
    for t in range(seq_enc):
        gates = input_seq[t] @ p["w_ih"].T + h @ p["w_hh"].T + b
        i = jax.nn.sigmoid(gates[:, 0:H])
        f = jax.nn.sigmoid(gates[:, H:2 * H])
        g = jnp.tanh(gates[:, 2 * H:3 * H])
        o = jax.nn.sigmoid(gates[:, 3 * H:])
        c = f * c + i * g
        h = o * jnp.tanh(c)
        enc.append(h)
    enc = jnp.stack(enc)                                   # (S, B, H)
    hd = h
    x_in = input_seq[-1]
    bd = p["bd_ih"] + p["bd_hh"]
    preds = []
    for _ in range(pred_length):
        hd = jnp.tanh(x_in @ p["wd_ih"].T + hd @ p["wd_hh"].T + bd)
        scores = jnp.einsum("sbh,bh->bs", enc, hd)
        attn = jax.nn.softmax(scores, axis=-1)
        context = jnp.einsum("bs,sbh->bh", attn, enc)
        pred = jax.nn.relu(context @ p["w_lin"].T + p["b_lin"])
        preds.append(pred)
        x_in = pred
    return jnp.stack(preds)[:, :, None, :]


if __name__ == "__main__":
    H, in_size, out_size = 32, 1, 1
    seq_len, batch, pred_length = 8, 2, 4

    key = jax.random.PRNGKey(0)
    ks = jax.random.split(key, 13)
    scale = 1.0 / np.sqrt(H)
    u = lambda kk, shape: jax.random.uniform(kk, shape, jnp.float32, -scale, scale)

    params = {
        # nn.LSTM(input_size=1, hidden=H)
        "w_ih": u(ks[0], (4 * H, in_size)),
        "w_hh": u(ks[1], (4 * H, H)),
        "b_ih": u(ks[2], (4 * H,)),
        "b_hh": u(ks[3], (4 * H,)),
        # nn.RNN(output_size=1, hidden=H), tanh nonlinearity
        "wd_ih": u(ks[4], (H, out_size)),
        "wd_hh": u(ks[5], (H, H)),
        "bd_ih": u(ks[6], (H,)),
        "bd_hh": u(ks[7], (H,)),
        # nn.Linear(H, output_size) followed by ReLU
        "w_lin": u(ks[8], (out_size, H)),
        "b_lin": u(ks[9], (out_size,)),
    }

    input_seq = jax.random.normal(ks[10], (seq_len, batch, in_size), jnp.float32)
    h0 = 0.1 * jax.random.normal(ks[11], (batch, H), jnp.float32)
    c0 = 0.1 * jax.random.normal(ks[12], (batch, H), jnp.float32)

    out = lstm_attn_forward(input_seq, h0, c0, params, pred_length)
    out = jax.block_until_ready(out)

    ref = reference_forward(input_seq, h0, c0, params, pred_length)
    np.testing.assert_allclose(np.asarray(out), np.asarray(ref), rtol=1e-2, atol=1e-2)
    print("KERNEL_OK")
</pallas_src>

<mosaic_0001>
module attributes {stable_mosaic.version = 11 : i64} {
  func.func @lstm_attn_kernel(%arg0: i32, %arg1: memref<8x2x1xf32, #tpu.memory_space<vmem>>, %arg2: memref<2x32xf32, #tpu.memory_space<vmem>>, %arg3: memref<2x32xf32, #tpu.memory_space<vmem>>, %arg4: memref<1x128xf32, #tpu.memory_space<vmem>>, %arg5: memref<32x128xf32, #tpu.memory_space<vmem>>, %arg6: memref<1x128xf32, #tpu.memory_space<vmem>>, %arg7: memref<1x32xf32, #tpu.memory_space<vmem>>, %arg8: memref<32x32xf32, #tpu.memory_space<vmem>>, %arg9: memref<1x32xf32, #tpu.memory_space<vmem>>, %arg10: memref<32x1xf32, #tpu.memory_space<vmem>>, %arg11: memref<1x1xf32, #tpu.memory_space<vmem>>, %arg12: memref<4x2x1xf32, #tpu.memory_space<vmem>>, %arg13: memref<7x2x32xf32, #tpu.memory_space<vmem>>) attributes {dimension_semantics = [#tpu.dimension_semantics<parallel>], iteration_bounds = array<i64: 1>, scalar_prefetch = 0 : i64, scratch_operands = 1 : i64, tpu.core_type = #tpu.core_type<tc>, window_params = [{transform_indices = @transform_0, window_bounds = array<i64: 8, 2, 1>}, {transform_indices = @transform_1, window_bounds = array<i64: 2, 32>}, {transform_indices = @transform_2, window_bounds = array<i64: 2, 32>}, {pipeline_mode = #tpu.pipeline_mode<synchronous>, transform_indices = @transform_3, window_bounds = array<i64: 1, 128>}, {pipeline_mode = #tpu.pipeline_mode<synchronous>, transform_indices = @transform_4, window_bounds = array<i64: 32, 128>}, {pipeline_mode = #tpu.pipeline_mode<synchronous>, transform_indices = @transform_5, window_bounds = array<i64: 1, 128>}, {pipeline_mode = #tpu.pipeline_mode<synchronous>, transform_indices = @transform_6, window_bounds = array<i64: 1, 32>}, {pipeline_mode = #tpu.pipeline_mode<synchronous>, transform_indices = @transform_7, window_bounds = array<i64: 32, 32>}, {pipeline_mode = #tpu.pipeline_mode<synchronous>, transform_indices = @transform_8, window_bounds = array<i64: 1, 32>}, {pipeline_mode = #tpu.pipeline_mode<synchronous>, transform_indices = @transform_9, window_bounds = array<i64: 32, 1>}, {pipeline_mode = #tpu.pipeline_mode<synchronous>, transform_indices = @transform_10, window_bounds = array<i64: 1, 1>}, {transform_indices = @transform_11, window_bounds = array<i64: 4, 2, 1>}]} {
    %c0 = arith.constant 0 : index
    %c0_0 = arith.constant 0 : index
    %0 = vector.load %arg4[%c0, %c0_0] : memref<1x128xf32, #tpu.memory_space<vmem>>, vector<1x128xf32>
    %c0_1 = arith.constant 0 : index
    %c0_2 = arith.constant 0 : index
    %1 = vector.load %arg5[%c0_1, %c0_2] : memref<32x128xf32, #tpu.memory_space<vmem>>, vector<32x128xf32>
    %c0_3 = arith.constant 0 : index
    %c0_4 = arith.constant 0 : index
    %2 = vector.load %arg6[%c0_3, %c0_4] : memref<1x128xf32, #tpu.memory_space<vmem>>, vector<1x128xf32>
    %3 = vector.shape_cast %2 : vector<1x128xf32> to vector<1x128xf32>
    %4 = vector.broadcast %3 : vector<1x128xf32> to vector<2x128xf32>
    %c0_5 = arith.constant 0 : index
    %c0_6 = arith.constant 0 : index
    %5 = vector.load %arg2[%c0_5, %c0_6] : memref<2x32xf32, #tpu.memory_space<vmem>>, vector<2x32xf32>
    %c0_7 = arith.constant 0 : index
    %c0_8 = arith.constant 0 : index
    %6 = vector.load %arg3[%c0_7, %c0_8] : memref<2x32xf32, #tpu.memory_space<vmem>>, vector<2x32xf32>
    %c0_9 = arith.constant 0 : index
    %c0_10 = arith.constant 0 : index
    %c0_11 = arith.constant 0 : index
    %7 = vector.load %arg1[%c0_9, %c0_10, %c0_11] : memref<8x2x1xf32, #tpu.memory_space<vmem>>, vector<1x2x1xf32>
    %8 = vector.shape_cast %7 : vector<1x2x1xf32> to vector<2x1xf32>
    %9 = vector.broadcast %8 : vector<2x1xf32> to vector<2x128xf32>
    %10 = vector.broadcast %0 : vector<1x128xf32> to vector<2x128xf32>
    %11 = arith.mulf %9, %10 : vector<2x128xf32>
    %cst = arith.constant dense<0.000000e+00> : vector<2x128xf32>
    %12 = tpu.matmul %5, %1, %cst {dimension_numbers = #tpu.dot_dimension_numbers<[1], [0], [0], [1], [0, 0, 1, 1], [], []>} : vector<2x32xf32>, vector<32x128xf32>, vector<2x128xf32> -> vector<2x128xf32>
    %13 = arith.addf %11, %12 : vector<2x128xf32>
    %14 = arith.addf %13, %4 : vector<2x128xf32>
    %15 = vector.extract_strided_slice %14 {offsets = [0, 0], sizes = [2, 96], strides = [1, 1]} : vector<2x128xf32> to vector<2x96xf32>
    %16 = arith.negf %15 : vector<2x96xf32>
    %17 = math.exp %16 : vector<2x96xf32>
    %cst_12 = arith.constant 1.000000e+00 : f32
    %18 = vector.broadcast %cst_12 : f32 to vector<2x96xf32>
    %19 = arith.addf %18, %17 : vector<2x96xf32>
    %20 = arith.divf %18, %19 : vector<2x96xf32>
    %21 = vector.extract_strided_slice %14 {offsets = [0, 96], sizes = [2, 32], strides = [1, 1]} : vector<2x128xf32> to vector<2x32xf32>
    %22 = math.tanh %21 : vector<2x32xf32>
    %23 = vector.extract_strided_slice %20 {offsets = [0, 0], sizes = [2, 32], strides = [1, 1]} : vector<2x96xf32> to vector<2x32xf32>
    %24 = vector.extract_strided_slice %20 {offsets = [0, 32], sizes = [2, 32], strides = [1, 1]} : vector<2x96xf32> to vector<2x32xf32>
    %25 = vector.extract_strided_slice %20 {offsets = [0, 64], sizes = [2, 32], strides = [1, 1]} : vector<2x96xf32> to vector<2x32xf32>
    %26 = arith.mulf %24, %6 : vector<2x32xf32>
    %27 = arith.mulf %23, %22 : vector<2x32xf32>
    %28 = arith.addf %26, %27 : vector<2x32xf32>
    %29 = math.tanh %28 : vector<2x32xf32>
    %30 = arith.mulf %25, %29 : vector<2x32xf32>
    %c0_13 = arith.constant 0 : index
    %c0_14 = arith.constant 0 : index
    %c0_15 = arith.constant 0 : index
    %31 = vector.load %arg13[%c0_13, %c0_14, %c0_15] : memref<7x2x32xf32, #tpu.memory_space<vmem>>, vector<1x2x32xf32>
    %32 = vector.shape_cast %31 : vector<1x2x32xf32> to vector<2x32xf32>
    %33 = vector.shape_cast %30 : vector<2x32xf32> to vector<1x2x32xf32>
    tpu.vector_store %arg13[%c0_13, %c0_14, %c0_15], %33 {strides = array<i32>} : memref<7x2x32xf32, #tpu.memory_space<vmem>>, vector<1x2x32xf32>,
    %c1 = arith.constant 1 : index
    %c0_16 = arith.constant 0 : index
    %c0_17 = arith.constant 0 : index
    %34 = vector.load %arg1[%c1, %c0_16, %c0_17] : memref<8x2x1xf32, #tpu.memory_space<vmem>>, vector<1x2x1xf32>
    %35 = vector.shape_cast %34 : vector<1x2x1xf32> to vector<2x1xf32>
    %36 = vector.broadcast %35 : vector<2x1xf32> to vector<2x128xf32>
    %37 = vector.broadcast %0 : vector<1x128xf32> to vector<2x128xf32>
    %38 = arith.mulf %36, %37 : vector<2x128xf32>
    %cst_18 = arith.constant dense<0.000000e+00> : vector<2x128xf32>
    %39 = tpu.matmul %30, %1, %cst_18 {dimension_numbers = #tpu.dot_dimension_numbers<[1], [0], [0], [1], [0, 0, 1, 1], [], []>} : vector<2x32xf32>, vector<32x128xf32>, vector<2x128xf32> -> vector<2x128xf32>
    %40 = arith.addf %38, %39 : vector<2x128xf32>
    %41 = arith.addf %40, %4 : vector<2x128xf32>
    %42 = vector.extract_strided_slice %41 {offsets = [0, 0], sizes = [2, 96], strides = [1, 1]} : vector<2x128xf32> to vector<2x96xf32>
    %43 = arith.negf %42 : vector<2x96xf32>
    %44 = math.exp %43 : vector<2x96xf32>
    %cst_19 = arith.constant 1.000000e+00 : f32
    %45 = vector.broadcast %cst_19 : f32 to vector<2x96xf32>
    %46 = arith.addf %45, %44 : vector<2x96xf32>
    %47 = arith.divf %45, %46 : vector<2x96xf32>
    %48 = vector.extract_strided_slice %41 {offsets = [0, 96], sizes = [2, 32], strides = [1, 1]} : vector<2x128xf32> to vector<2x32xf32>
    %49 = math.tanh %48 : vector<2x32xf32>
    %50 = vector.extract_strided_slice %47 {offsets = [0, 0], sizes = [2, 32], strides = [1, 1]} : vector<2x96xf32> to vector<2x32xf32>
    %51 = vector.extract_strided_slice %47 {offsets = [0, 32], sizes = [2, 32], strides = [1, 1]} : vector<2x96xf32> to vector<2x32xf32>
    %52 = vector.extract_strided_slice %47 {offsets = [0, 64], sizes = [2, 32], strides = [1, 1]} : vector<2x96xf32> to vector<2x32xf32>
    %53 = arith.mulf %51, %28 : vector<2x32xf32>
    %54 = arith.mulf %50, %49 : vector<2x32xf32>
    %55 = arith.addf %53, %54 : vector<2x32xf32>
    %56 = math.tanh %55 : vector<2x32xf32>
    %57 = arith.mulf %52, %56 : vector<2x32xf32>
    %c1_20 = arith.constant 1 : index
    %c0_21 = arith.constant 0 : index
    %c0_22 = arith.constant 0 : index
    %58 = vector.load %arg13[%c1_20, %c0_21, %c0_22] : memref<7x2x32xf32, #tpu.memory_space<vmem>>, vector<1x2x32xf32>
    %59 = vector.shape_cast %58 : vector<1x2x32xf32> to vector<2x32xf32>
    %60 = vector.shape_cast %57 : vector<2x32xf32> to vector<1x2x32xf32>
    tpu.vector_store %arg13[%c1_20, %c0_21, %c0_22], %60 {strides = array<i32>} : memref<7x2x32xf32, #tpu.memory_space<vmem>>, vector<1x2x32xf32>,
    %c2 = arith.constant 2 : index
    %c0_23 = arith.constant 0 : index
    %c0_24 = arith.constant 0 : index
    %61 = vector.load %arg1[%c2, %c0_23, %c0_24] : memref<8x2x1xf32, #tpu.memory_space<vmem>>, vector<1x2x1xf32>
    %62 = vector.shape_cast %61 : vector<1x2x1xf32> to vector<2x1xf32>
    %63 = vector.broadcast %62 : vector<2x1xf32> to vector<2x128xf32>
    %64 = vector.broadcast %0 : vector<1x128xf32> to vector<2x128xf32>
    %65 = arith.mulf %63, %64 : vector<2x128xf32>
    %cst_25 = arith.constant dense<0.000000e+00> : vector<2x128xf32>
    %66 = tpu.matmul %57, %1, %cst_25 {dimension_numbers = #tpu.dot_dimension_numbers<[1], [0], [0], [1], [0, 0, 1, 1], [], []>} : vector<2x32xf32>, vector<32x128xf32>, vector<2x128xf32> -> vector<2x128xf32>
    %67 = arith.addf %65, %66 : vector<2x128xf32>
    %68 = arith.addf %67, %4 : vector<2x128xf32>
    %69 = vector.extract_strided_slice %68 {offsets = [0, 0], sizes = [2, 96], strides = [1, 1]} : vector<2x128xf32> to vector<2x96xf32>
    %70 = arith.negf %69 : vector<2x96xf32>
    %71 = math.exp %70 : vector<2x96xf32>
    %cst_26 = arith.constant 1.000000e+00 : f32
    %72 = vector.broadcast %cst_26 : f32 to vector<2x96xf32>
    %73 = arith.addf %72, %71 : vector<2x96xf32>
    %74 = arith.divf %72, %73 : vector<2x96xf32>
    %75 = vector.extract_strided_slice %68 {offsets = [0, 96], sizes = [2, 32], strides = [1, 1]} : vector<2x128xf32> to vector<2x32xf32>
    %76 = math.tanh %75 : vector<2x32xf32>
    %77 = vector.extract_strided_slice %74 {offsets = [0, 0], sizes = [2, 32], strides = [1, 1]} : vector<2x96xf32> to vector<2x32xf32>
    %78 = vector.extract_strided_slice %74 {offsets = [0, 32], sizes = [2, 32], strides = [1, 1]} : vector<2x96xf32> to vector<2x32xf32>
    %79 = vector.extract_strided_slice %74 {offsets = [0, 64], sizes = [2, 32], strides = [1, 1]} : vector<2x96xf32> to vector<2x32xf32>
    %80 = arith.mulf %78, %55 : vector<2x32xf32>
    %81 = arith.mulf %77, %76 : vector<2x32xf32>
    %82 = arith.addf %80, %81 : vector<2x32xf32>
    %83 = math.tanh %82 : vector<2x32xf32>
    %84 = arith.mulf %79, %83 : vector<2x32xf32>
    %c2_27 = arith.constant 2 : index
    %c0_28 = arith.constant 0 : index
    %c0_29 = arith.constant 0 : index
    %85 = vector.load %arg13[%c2_27, %c0_28, %c0_29] : memref<7x2x32xf32, #tpu.memory_space<vmem>>, vector<1x2x32xf32>
    %86 = vector.shape_cast %85 : vector<1x2x32xf32> to vector<2x32xf32>
    %87 = vector.shape_cast %84 : vector<2x32xf32> to vector<1x2x32xf32>
    tpu.vector_store %arg13[%c2_27, %c0_28, %c0_29], %87 {strides = array<i32>} : memref<7x2x32xf32, #tpu.memory_space<vmem>>, vector<1x2x32xf32>,
    %c3 = arith.constant 3 : index
    %c0_30 = arith.constant 0 : index
    %c0_31 = arith.constant 0 : index
    %88 = vector.load %arg1[%c3, %c0_30, %c0_31] : memref<8x2x1xf32, #tpu.memory_space<vmem>>, vector<1x2x1xf32>
    %89 = vector.shape_cast %88 : vector<1x2x1xf32> to vector<2x1xf32>
    %90 = vector.broadcast %89 : vector<2x1xf32> to vector<2x128xf32>
    %91 = vector.broadcast %0 : vector<1x128xf32> to vector<2x128xf32>
    %92 = arith.mulf %90, %91 : vector<2x128xf32>
    %cst_32 = arith.constant dense<0.000000e+00> : vector<2x128xf32>
    %93 = tpu.matmul %84, %1, %cst_32 {dimension_numbers = #tpu.dot_dimension_numbers<[1], [0], [0], [1], [0, 0, 1, 1], [], []>} : vector<2x32xf32>, vector<32x128xf32>, vector<2x128xf32> -> vector<2x128xf32>
    %94 = arith.addf %92, %93 : vector<2x128xf32>
    %95 = arith.addf %94, %4 : vector<2x128xf32>
    %96 = vector.extract_strided_slice %95 {offsets = [0, 0], sizes = [2, 96], strides = [1, 1]} : vector<2x128xf32> to vector<2x96xf32>
    %97 = arith.negf %96 : vector<2x96xf32>
    %98 = math.exp %97 : vector<2x96xf32>
    %cst_33 = arith.constant 1.000000e+00 : f32
    %99 = vector.broadcast %cst_33 : f32 to vector<2x96xf32>
    %100 = arith.addf %99, %98 : vector<2x96xf32>
    %101 = arith.divf %99, %100 : vector<2x96xf32>
    %102 = vector.extract_strided_slice %95 {offsets = [0, 96], sizes = [2, 32], strides = [1, 1]} : vector<2x128xf32> to vector<2x32xf32>
    %103 = math.tanh %102 : vector<2x32xf32>
    %104 = vector.extract_strided_slice %101 {offsets = [0, 0], sizes = [2, 32], strides = [1, 1]} : vector<2x96xf32> to vector<2x32xf32>
    %105 = vector.extract_strided_slice %101 {offsets = [0, 32], sizes = [2, 32], strides = [1, 1]} : vector<2x96xf32> to vector<2x32xf32>
    %106 = vector.extract_strided_slice %101 {offsets = [0, 64], sizes = [2, 32], strides = [1, 1]} : vector<2x96xf32> to vector<2x32xf32>
    %107 = arith.mulf %105, %82 : vector<2x32xf32>
    %108 = arith.mulf %104, %103 : vector<2x32xf32>
    %109 = arith.addf %107, %108 : vector<2x32xf32>
    %110 = math.tanh %109 : vector<2x32xf32>
    %111 = arith.mulf %106, %110 : vector<2x32xf32>
    %c3_34 = arith.constant 3 : index
    %c0_35 = arith.constant 0 : index
    %c0_36 = arith.constant 0 : index
    %112 = vector.load %arg13[%c3_34, %c0_35, %c0_36] : memref<7x2x32xf32, #tpu.memory_space<vmem>>, vector<1x2x32xf32>
    %113 = vector.shape_cast %112 : vector<1x2x32xf32> to vector<2x32xf32>
    %114 = vector.shape_cast %111 : vector<2x32xf32> to vector<1x2x32xf32>
    tpu.vector_store %arg13[%c3_34, %c0_35, %c0_36], %114 {strides = array<i32>} : memref<7x2x32xf32, #tpu.memory_space<vmem>>, vector<1x2x32xf32>,
    %c4 = arith.constant 4 : index
    %c0_37 = arith.constant 0 : index
    %c0_38 = arith.constant 0 : index
    %115 = vector.load %arg1[%c4, %c0_37, %c0_38] : memref<8x2x1xf32, #tpu.memory_space<vmem>>, vector<1x2x1xf32>
    %116 = vector.shape_cast %115 : vector<1x2x1xf32> to vector<2x1xf32>
    %117 = vector.broadcast %116 : vector<2x1xf32> to vector<2x128xf32>
    %118 = vector.broadcast %0 : vector<1x128xf32> to vector<2x128xf32>
    %119 = arith.mulf %117, %118 : vector<2x128xf32>
    %cst_39 = arith.constant dense<0.000000e+00> : vector<2x128xf32>
    %120 = tpu.matmul %111, %1, %cst_39 {dimension_numbers = #tpu.dot_dimension_numbers<[1], [0], [0], [1], [0, 0, 1, 1], [], []>} : vector<2x32xf32>, vector<32x128xf32>, vector<2x128xf32> -> vector<2x128xf32>
    %121 = arith.addf %119, %120 : vector<2x128xf32>
    %122 = arith.addf %121, %4 : vector<2x128xf32>
    %123 = vector.extract_strided_slice %122 {offsets = [0, 0], sizes = [2, 96], strides = [1, 1]} : vector<2x128xf32> to vector<2x96xf32>
    %124 = arith.negf %123 : vector<2x96xf32>
    %125 = math.exp %124 : vector<2x96xf32>
    %cst_40 = arith.constant 1.000000e+00 : f32
    %126 = vector.broadcast %cst_40 : f32 to vector<2x96xf32>
    %127 = arith.addf %126, %125 : vector<2x96xf32>
    %128 = arith.divf %126, %127 : vector<2x96xf32>
    %129 = vector.extract_strided_slice %122 {offsets = [0, 96], sizes = [2, 32], strides = [1, 1]} : vector<2x128xf32> to vector<2x32xf32>
    %130 = math.tanh %129 : vector<2x32xf32>
    %131 = vector.extract_strided_slice %128 {offsets = [0, 0], sizes = [2, 32], strides = [1, 1]} : vector<2x96xf32> to vector<2x32xf32>
    %132 = vector.extract_strided_slice %128 {offsets = [0, 32], sizes = [2, 32], strides = [1, 1]} : vector<2x96xf32> to vector<2x32xf32>
    %133 = vector.extract_strided_slice %128 {offsets = [0, 64], sizes = [2, 32], strides = [1, 1]} : vector<2x96xf32> to vector<2x32xf32>
    %134 = arith.mulf %132, %109 : vector<2x32xf32>
    %135 = arith.mulf %131, %130 : vector<2x32xf32>
    %136 = arith.addf %134, %135 : vector<2x32xf32>
    %137 = math.tanh %136 : vector<2x32xf32>
    %138 = arith.mulf %133, %137 : vector<2x32xf32>
    %c4_41 = arith.constant 4 : index
    %c0_42 = arith.constant 0 : index
    %c0_43 = arith.constant 0 : index
    %139 = vector.load %arg13[%c4_41, %c0_42, %c0_43] : memref<7x2x32xf32, #tpu.memory_space<vmem>>, vector<1x2x32xf32>
    %140 = vector.shape_cast %139 : vector<1x2x32xf32> to vector<2x32xf32>
    %141 = vector.shape_cast %138 : vector<2x32xf32> to vector<1x2x32xf32>
    tpu.vector_store %arg13[%c4_41, %c0_42, %c0_43], %141 {strides = array<i32>} : memref<7x2x32xf32, #tpu.memory_space<vmem>>, vector<1x2x32xf32>,
    %c5 = arith.constant 5 : index
    %c0_44 = arith.constant 0 : index
    %c0_45 = arith.constant 0 : index
    %142 = vector.load %arg1[%c5, %c0_44, %c0_45] : memref<8x2x1xf32, #tpu.memory_space<vmem>>, vector<1x2x1xf32>
    %143 = vector.shape_cast %142 : vector<1x2x1xf32> to vector<2x1xf32>
    %144 = vector.broadcast %143 : vector<2x1xf32> to vector<2x128xf32>
    %145 = vector.broadcast %0 : vector<1x128xf32> to vector<2x128xf32>
    %146 = arith.mulf %144, %145 : vector<2x128xf32>
    %cst_46 = arith.constant dense<0.000000e+00> : vector<2x128xf32>
    %147 = tpu.matmul %138, %1, %cst_46 {dimension_numbers = #tpu.dot_dimension_numbers<[1], [0], [0], [1], [0, 0, 1, 1], [], []>} : vector<2x32xf32>, vector<32x128xf32>, vector<2x128xf32> -> vector<2x128xf32>
    %148 = arith.addf %146, %147 : vector<2x128xf32>
    %149 = arith.addf %148, %4 : vector<2x128xf32>
    %150 = vector.extract_strided_slice %149 {offsets = [0, 0], sizes = [2, 96], strides = [1, 1]} : vector<2x128xf32> to vector<2x96xf32>
    %151 = arith.negf %150 : vector<2x96xf32>
    %152 = math.exp %151 : vector<2x96xf32>
    %cst_47 = arith.constant 1.000000e+00 : f32
    %153 = vector.broadcast %cst_47 : f32 to vector<2x96xf32>
    %154 = arith.addf %153, %152 : vector<2x96xf32>
    %155 = arith.divf %153, %154 : vector<2x96xf32>
    %156 = vector.extract_strided_slice %149 {offsets = [0, 96], sizes = [2, 32], strides = [1, 1]} : vector<2x128xf32> to vector<2x32xf32>
    %157 = math.tanh %156 : vector<2x32xf32>
    %158 = vector.extract_strided_slice %155 {offsets = [0, 0], sizes = [2, 32], strides = [1, 1]} : vector<2x96xf32> to vector<2x32xf32>
    %159 = vector.extract_strided_slice %155 {offsets = [0, 32], sizes = [2, 32], strides = [1, 1]} : vector<2x96xf32> to vector<2x32xf32>
    %160 = vector.extract_strided_slice %155 {offsets = [0, 64], sizes = [2, 32], strides = [1, 1]} : vector<2x96xf32> to vector<2x32xf32>
    %161 = arith.mulf %159, %136 : vector<2x32xf32>
    %162 = arith.mulf %158, %157 : vector<2x32xf32>
    %163 = arith.addf %161, %162 : vector<2x32xf32>
    %164 = math.tanh %163 : vector<2x32xf32>
    %165 = arith.mulf %160, %164 : vector<2x32xf32>
    %c5_48 = arith.constant 5 : index
    %c0_49 = arith.constant 0 : index
    %c0_50 = arith.constant 0 : index
    %166 = vector.load %arg13[%c5_48, %c0_49, %c0_50] : memref<7x2x32xf32, #tpu.memory_space<vmem>>, vector<1x2x32xf32>
    %167 = vector.shape_cast %166 : vector<1x2x32xf32> to vector<2x32xf32>
    %168 = vector.shape_cast %165 : vector<2x32xf32> to vector<1x2x32xf32>
    tpu.vector_store %arg13[%c5_48, %c0_49, %c0_50], %168 {strides = array<i32>} : memref<7x2x32xf32, #tpu.memory_space<vmem>>, vector<1x2x32xf32>,
    %c6 = arith.constant 6 : index
    %c0_51 = arith.constant 0 : index
    %c0_52 = arith.constant 0 : index
    %169 = vector.load %arg1[%c6, %c0_51, %c0_52] : memref<8x2x1xf32, #tpu.memory_space<vmem>>, vector<1x2x1xf32>
    %170 = vector.shape_cast %169 : vector<1x2x1xf32> to vector<2x1xf32>
    %171 = vector.broadcast %170 : vector<2x1xf32> to vector<2x128xf32>
    %172 = vector.broadcast %0 : vector<1x128xf32> to vector<2x128xf32>
    %173 = arith.mulf %171, %172 : vector<2x128xf32>
    %cst_53 = arith.constant dense<0.000000e+00> : vector<2x128xf32>
    %174 = tpu.matmul %165, %1, %cst_53 {dimension_numbers = #tpu.dot_dimension_numbers<[1], [0], [0], [1], [0, 0, 1, 1], [], []>} : vector<2x32xf32>, vector<32x128xf32>, vector<2x128xf32> -> vector<2x128xf32>
    %175 = arith.addf %173, %174 : vector<2x128xf32>
    %176 = arith.addf %175, %4 : vector<2x128xf32>
    %177 = vector.extract_strided_slice %176 {offsets = [0, 0], sizes = [2, 96], strides = [1, 1]} : vector<2x128xf32> to vector<2x96xf32>
    %178 = arith.negf %177 : vector<2x96xf32>
    %179 = math.exp %178 : vector<2x96xf32>
    %cst_54 = arith.constant 1.000000e+00 : f32
    %180 = vector.broadcast %cst_54 : f32 to vector<2x96xf32>
    %181 = arith.addf %180, %179 : vector<2x96xf32>
    %182 = arith.divf %180, %181 : vector<2x96xf32>
    %183 = vector.extract_strided_slice %176 {offsets = [0, 96], sizes = [2, 32], strides = [1, 1]} : vector<2x128xf32> to vector<2x32xf32>
    %184 = math.tanh %183 : vector<2x32xf32>
    %185 = vector.extract_strided_slice %182 {offsets = [0, 0], sizes = [2, 32], strides = [1, 1]} : vector<2x96xf32> to vector<2x32xf32>
    %186 = vector.extract_strided_slice %182 {offsets = [0, 32], sizes = [2, 32], strides = [1, 1]} : vector<2x96xf32> to vector<2x32xf32>
    %187 = vector.extract_strided_slice %182 {offsets = [0, 64], sizes = [2, 32], strides = [1, 1]} : vector<2x96xf32> to vector<2x32xf32>
    %188 = arith.mulf %186, %163 : vector<2x32xf32>
    %189 = arith.mulf %185, %184 : vector<2x32xf32>
    %190 = arith.addf %188, %189 : vector<2x32xf32>
    %191 = math.tanh %190 : vector<2x32xf32>
    %192 = arith.mulf %187, %191 : vector<2x32xf32>
    %c6_55 = arith.constant 6 : index
    %c0_56 = arith.constant 0 : index
    %c0_57 = arith.constant 0 : index
    %193 = vector.load %arg13[%c6_55, %c0_56, %c0_57] : memref<7x2x32xf32, #tpu.memory_space<vmem>>, vector<1x2x32xf32>
    %194 = vector.shape_cast %193 : vector<1x2x32xf32> to vector<2x32xf32>
    %195 = vector.shape_cast %192 : vector<2x32xf32> to vector<1x2x32xf32>
    tpu.vector_store %arg13[%c6_55, %c0_56, %c0_57], %195 {strides = array<i32>} : memref<7x2x32xf32, #tpu.memory_space<vmem>>, vector<1x2x32xf32>,
    %c0_58 = arith.constant 0 : index
    %c0_59 = arith.constant 0 : index
    %c0_60 = arith.constant 0 : index
    %196 = vector.load %arg13[%c0_58, %c0_59, %c0_60] : memref<7x2x32xf32, #tpu.memory_space<vmem>>, vector<7x2x32xf32>
    %197 = tpu.transpose %196, [1, 0, 2] : vector<7x2x32xf32> -> vector<2x7x32xf32>
    %c0_61 = arith.constant 0 : index
    %c0_62 = arith.constant 0 : index
    %198 = vector.load %arg7[%c0_61, %c0_62] : memref<1x32xf32, #tpu.memory_space<vmem>>, vector<1x32xf32>
    %c0_63 = arith.constant 0 : index
    %c0_64 = arith.constant 0 : index
    %199 = vector.load %arg8[%c0_63, %c0_64] : memref<32x32xf32, #tpu.memory_space<vmem>>, vector<32x32xf32>
    %c0_65 = arith.constant 0 : index
    %c0_66 = arith.constant 0 : index
    %200 = vector.load %arg10[%c0_65, %c0_66] : memref<32x1xf32, #tpu.memory_space<vmem>>, vector<32x1xf32>
    %c0_67 = arith.constant 0 : index
    %c0_68 = arith.constant 0 : index
    %201 = vector.load %arg9[%c0_67, %c0_68] : memref<1x32xf32, #tpu.memory_space<vmem>>, vector<1x32xf32>
    %202 = vector.shape_cast %201 : vector<1x32xf32> to vector<1x32xf32>
    %203 = vector.broadcast %202 : vector<1x32xf32> to vector<2x32xf32>
    %c0_69 = arith.constant 0 : index
    %c0_70 = arith.constant 0 : index
    %204 = vector.load %arg11[%c0_69, %c0_70] : memref<1x1xf32, #tpu.memory_space<vmem>>, vector<1x1xf32>
    %205 = vector.shape_cast %204 : vector<1x1xf32> to vector<1x1xf32>
    %206 = vector.broadcast %205 : vector<1x1xf32> to vector<2x1xf32>
    %c7 = arith.constant 7 : index
    %c0_71 = arith.constant 0 : index
    %c0_72 = arith.constant 0 : index
    %207 = vector.load %arg1[%c7, %c0_71, %c0_72] : memref<8x2x1xf32, #tpu.memory_space<vmem>>, vector<1x2x1xf32>
    %208 = vector.shape_cast %207 : vector<1x2x1xf32> to vector<2x1xf32>
    %209 = vector.broadcast %208 : vector<2x1xf32> to vector<2x32xf32>
    %210 = vector.broadcast %198 : vector<1x32xf32> to vector<2x32xf32>
    %211 = arith.mulf %209, %210 : vector<2x32xf32>
    %cst_73 = arith.constant dense<0.000000e+00> : vector<2x32xf32>
    %212 = tpu.matmul %192, %199, %cst_73 {dimension_numbers = #tpu.dot_dimension_numbers<[1], [0], [0], [1], [0, 0, 1, 1], [], []>} : vector<2x32xf32>, vector<32x32xf32>, vector<2x32xf32> -> vector<2x32xf32>
    %213 = arith.addf %211, %212 : vector<2x32xf32>
    %214 = arith.addf %213, %203 : vector<2x32xf32>
    %215 = math.tanh %214 : vector<2x32xf32>
    %216 = vector.shape_cast %215 : vector<2x32xf32> to vector<2x1x32xf32>
    "tpu.trace_start"() <{level = 10 : i32, message = "bqh,bsh->bqs"}> : () -> ()
    %cst_74 = arith.constant dense<0.000000e+00> : vector<2x1x7xf32>
    %217 = tpu.matmul %216, %197, %cst_74 {dimension_numbers = #tpu.dot_dimension_numbers<[2], [2], [1], [1], [0, 0, 0, 1, 1, 1], [0], [0]>} : vector<2x1x32xf32>, vector<2x7x32xf32>, vector<2x1x7xf32> -> vector<2x1x7xf32>
    "tpu.trace_stop"() : () -> ()
    %cst_75 = arith.constant dense<0xFF800000> : vector<2x1xf32>
    %218 = vector.multi_reduction <maximumf>, %217, %cst_75 [2] : vector<2x1x7xf32> to vector<2x1xf32>
    %219 = vector.shape_cast %218 : vector<2x1xf32> to vector<2x1x1xf32>
    %220 = vector.broadcast %219 : vector<2x1x1xf32> to vector<2x1x7xf32>
    %221 = arith.subf %217, %220 : vector<2x1x7xf32>
    %222 = math.exp %221 : vector<2x1x7xf32>
    %cst_76 = arith.constant dense<0.000000e+00> : vector<2x1xf32>
    %223 = vector.multi_reduction <add>, %222, %cst_76 [2] : vector<2x1x7xf32> to vector<2x1xf32>
    %224 = vector.shape_cast %223 : vector<2x1xf32> to vector<2x1x1xf32>
    %225 = vector.broadcast %224 : vector<2x1x1xf32> to vector<2x1x7xf32>
    %226 = arith.divf %222, %225 : vector<2x1x7xf32>
    "tpu.trace_start"() <{level = 10 : i32, message = "bqs,bsh->bqh"}> : () -> ()
    %cst_77 = arith.constant dense<0.000000e+00> : vector<2x1x32xf32>
    %227 = tpu.matmul %226, %197, %cst_77 {dimension_numbers = #tpu.dot_dimension_numbers<[2], [1], [1], [2], [0, 0, 0, 1, 1, 2], [0], [0]>} : vector<2x1x7xf32>, vector<2x7x32xf32>, vector<2x1x32xf32> -> vector<2x1x32xf32>
    "tpu.trace_stop"() : () -> ()
    %228 = vector.shape_cast %227 : vector<2x1x32xf32> to vector<2x32xf32>
    %cst_78 = arith.constant dense<0.000000e+00> : vector<2x1xf32>
    %229 = tpu.matmul %228, %200, %cst_78 {dimension_numbers = #tpu.dot_dimension_numbers<[1], [0], [0], [1], [0, 0, 1, 1], [], []>} : vector<2x32xf32>, vector<32x1xf32>, vector<2x1xf32> -> vector<2x1xf32>
    %230 = arith.addf %229, %206 : vector<2x1xf32>
    %cst_79 = arith.constant 0.000000e+00 : f32
    %231 = vector.broadcast %cst_79 : f32 to vector<2x1xf32>
    %232 = arith.maximumf %230, %231 : vector<2x1xf32>
    %c0_80 = arith.constant 0 : index
    %c0_81 = arith.constant 0 : index
    %c0_82 = arith.constant 0 : index
    %233 = vector.load %arg12[%c0_80, %c0_81, %c0_82] : memref<4x2x1xf32, #tpu.memory_space<vmem>>, vector<1x2x1xf32>
    %234 = vector.shape_cast %233 : vector<1x2x1xf32> to vector<2x1xf32>
    %235 = vector.shape_cast %232 : vector<2x1xf32> to vector<1x2x1xf32>
    tpu.vector_store %arg12[%c0_80, %c0_81, %c0_82], %235 {strides = array<i32>} : memref<4x2x1xf32, #tpu.memory_space<vmem>>, vector<1x2x1xf32>,
    %236 = vector.broadcast %232 : vector<2x1xf32> to vector<2x32xf32>
    %237 = vector.broadcast %198 : vector<1x32xf32> to vector<2x32xf32>
    %238 = arith.mulf %236, %237 : vector<2x32xf32>
    %cst_83 = arith.constant dense<0.000000e+00> : vector<2x32xf32>
    %239 = tpu.matmul %215, %199, %cst_83 {dimension_numbers = #tpu.dot_dimension_numbers<[1], [0], [0], [1], [0, 0, 1, 1], [], []>} : vector<2x32xf32>, vector<32x32xf32>, vector<2x32xf32> -> vector<2x32xf32>
    %240 = arith.addf %238, %239 : vector<2x32xf32>
    %241 = arith.addf %240, %203 : vector<2x32xf32>
    %242 = math.tanh %241 : vector<2x32xf32>
    %243 = vector.shape_cast %242 : vector<2x32xf32> to vector<2x1x32xf32>
    "tpu.trace_start"() <{level = 10 : i32, message = "bqh,bsh->bqs"}> : () -> ()
    %cst_84 = arith.constant dense<0.000000e+00> : vector<2x1x7xf32>
    %244 = tpu.matmul %243, %197, %cst_84 {dimension_numbers = #tpu.dot_dimension_numbers<[2], [2], [1], [1], [0, 0, 0, 1, 1, 1], [0], [0]>} : vector<2x1x32xf32>, vector<2x7x32xf32>, vector<2x1x7xf32> -> vector<2x1x7xf32>
    "tpu.trace_stop"() : () -> ()
    %cst_85 = arith.constant dense<0xFF800000> : vector<2x1xf32>
    %245 = vector.multi_reduction <maximumf>, %244, %cst_85 [2] : vector<2x1x7xf32> to vector<2x1xf32>
    %246 = vector.shape_cast %245 : vector<2x1xf32> to vector<2x1x1xf32>
    %247 = vector.broadcast %246 : vector<2x1x1xf32> to vector<2x1x7xf32>
    %248 = arith.subf %244, %247 : vector<2x1x7xf32>
    %249 = math.exp %248 : vector<2x1x7xf32>
    %cst_86 = arith.constant dense<0.000000e+00> : vector<2x1xf32>
    %250 = vector.multi_reduction <add>, %249, %cst_86 [2] : vector<2x1x7xf32> to vector<2x1xf32>
    %251 = vector.shape_cast %250 : vector<2x1xf32> to vector<2x1x1xf32>
    %252 = vector.broadcast %251 : vector<2x1x1xf32> to vector<2x1x7xf32>
    %253 = arith.divf %249, %252 : vector<2x1x7xf32>
    "tpu.trace_start"() <{level = 10 : i32, message = "bqs,bsh->bqh"}> : () -> ()
    %cst_87 = arith.constant dense<0.000000e+00> : vector<2x1x32xf32>
    %254 = tpu.matmul %253, %197, %cst_87 {dimension_numbers = #tpu.dot_dimension_numbers<[2], [1], [1], [2], [0, 0, 0, 1, 1, 2], [0], [0]>} : vector<2x1x7xf32>, vector<2x7x32xf32>, vector<2x1x32xf32> -> vector<2x1x32xf32>
    "tpu.trace_stop"() : () -> ()
    %255 = vector.shape_cast %254 : vector<2x1x32xf32> to vector<2x32xf32>
    %cst_88 = arith.constant dense<0.000000e+00> : vector<2x1xf32>
    %256 = tpu.matmul %255, %200, %cst_88 {dimension_numbers = #tpu.dot_dimension_numbers<[1], [0], [0], [1], [0, 0, 1, 1], [], []>} : vector<2x32xf32>, vector<32x1xf32>, vector<2x1xf32> -> vector<2x1xf32>
    %257 = arith.addf %256, %206 : vector<2x1xf32>
    %cst_89 = arith.constant 0.000000e+00 : f32
    %258 = vector.broadcast %cst_89 : f32 to vector<2x1xf32>
    %259 = arith.maximumf %257, %258 : vector<2x1xf32>
    %c1_90 = arith.constant 1 : index
    %c0_91 = arith.constant 0 : index
    %c0_92 = arith.constant 0 : index
    %260 = vector.load %arg12[%c1_90, %c0_91, %c0_92] : memref<4x2x1xf32, #tpu.memory_space<vmem>>, vector<1x2x1xf32>
    %261 = vector.shape_cast %260 : vector<1x2x1xf32> to vector<2x1xf32>
    %262 = vector.shape_cast %259 : vector<2x1xf32> to vector<1x2x1xf32>
    tpu.vector_store %arg12[%c1_90, %c0_91, %c0_92], %262 {strides = array<i32>} : memref<4x2x1xf32, #tpu.memory_space<vmem>>, vector<1x2x1xf32>,
    %263 = vector.broadcast %259 : vector<2x1xf32> to vector<2x32xf32>
    %264 = vector.broadcast %198 : vector<1x32xf32> to vector<2x32xf32>
    %265 = arith.mulf %263, %264 : vector<2x32xf32>
    %cst_93 = arith.constant dense<0.000000e+00> : vector<2x32xf32>
    %266 = tpu.matmul %242, %199, %cst_93 {dimension_numbers = #tpu.dot_dimension_numbers<[1], [0], [0], [1], [0, 0, 1, 1], [], []>} : vector<2x32xf32>, vector<32x32xf32>, vector<2x32xf32> -> vector<2x32xf32>
    %267 = arith.addf %265, %266 : vector<2x32xf32>
    %268 = arith.addf %267, %203 : vector<2x32xf32>
    %269 = math.tanh %268 : vector<2x32xf32>
    %270 = vector.shape_cast %269 : vector<2x32xf32> to vector<2x1x32xf32>
    "tpu.trace_start"() <{level = 10 : i32, message = "bqh,bsh->bqs"}> : () -> ()
    %cst_94 = arith.constant dense<0.000000e+00> : vector<2x1x7xf32>
    %271 = tpu.matmul %270, %197, %cst_94 {dimension_numbers = #tpu.dot_dimension_numbers<[2], [2], [1], [1], [0, 0, 0, 1, 1, 1], [0], [0]>} : vector<2x1x32xf32>, vector<2x7x32xf32>, vector<2x1x7xf32> -> vector<2x1x7xf32>
    "tpu.trace_stop"() : () -> ()
    %cst_95 = arith.constant dense<0xFF800000> : vector<2x1xf32>
    %272 = vector.multi_reduction <maximumf>, %271, %cst_95 [2] : vector<2x1x7xf32> to vector<2x1xf32>
    %273 = vector.shape_cast %272 : vector<2x1xf32> to vector<2x1x1xf32>
    %274 = vector.broadcast %273 : vector<2x1x1xf32> to vector<2x1x7xf32>
    %275 = arith.subf %271, %274 : vector<2x1x7xf32>
    %276 = math.exp %275 : vector<2x1x7xf32>
    %cst_96 = arith.constant dense<0.000000e+00> : vector<2x1xf32>
    %277 = vector.multi_reduction <add>, %276, %cst_96 [2] : vector<2x1x7xf32> to vector<2x1xf32>
    %278 = vector.shape_cast %277 : vector<2x1xf32> to vector<2x1x1xf32>
    %279 = vector.broadcast %278 : vector<2x1x1xf32> to vector<2x1x7xf32>
    %280 = arith.divf %276, %279 : vector<2x1x7xf32>
    "tpu.trace_start"() <{level = 10 : i32, message = "bqs,bsh->bqh"}> : () -> ()
    %cst_97 = arith.constant dense<0.000000e+00> : vector<2x1x32xf32>
    %281 = tpu.matmul %280, %197, %cst_97 {dimension_numbers = #tpu.dot_dimension_numbers<[2], [1], [1], [2], [0, 0, 0, 1, 1, 2], [0], [0]>} : vector<2x1x7xf32>, vector<2x7x32xf32>, vector<2x1x32xf32> -> vector<2x1x32xf32>
    "tpu.trace_stop"() : () -> ()
    %282 = vector.shape_cast %281 : vector<2x1x32xf32> to vector<2x32xf32>
    %cst_98 = arith.constant dense<0.000000e+00> : vector<2x1xf32>
    %283 = tpu.matmul %282, %200, %cst_98 {dimension_numbers = #tpu.dot_dimension_numbers<[1], [0], [0], [1], [0, 0, 1, 1], [], []>} : vector<2x32xf32>, vector<32x1xf32>, vector<2x1xf32> -> vector<2x1xf32>
    %284 = arith.addf %283, %206 : vector<2x1xf32>
    %cst_99 = arith.constant 0.000000e+00 : f32
    %285 = vector.broadcast %cst_99 : f32 to vector<2x1xf32>
    %286 = arith.maximumf %284, %285 : vector<2x1xf32>
    %c2_100 = arith.constant 2 : index
    %c0_101 = arith.constant 0 : index
    %c0_102 = arith.constant 0 : index
    %287 = vector.load %arg12[%c2_100, %c0_101, %c0_102] : memref<4x2x1xf32, #tpu.memory_space<vmem>>, vector<1x2x1xf32>
    %288 = vector.shape_cast %287 : vector<1x2x1xf32> to vector<2x1xf32>
    %289 = vector.shape_cast %286 : vector<2x1xf32> to vector<1x2x1xf32>
    tpu.vector_store %arg12[%c2_100, %c0_101, %c0_102], %289 {strides = array<i32>} : memref<4x2x1xf32, #tpu.memory_space<vmem>>, vector<1x2x1xf32>,
    %290 = vector.broadcast %286 : vector<2x1xf32> to vector<2x32xf32>
    %291 = vector.broadcast %198 : vector<1x32xf32> to vector<2x32xf32>
    %292 = arith.mulf %290, %291 : vector<2x32xf32>
    %cst_103 = arith.constant dense<0.000000e+00> : vector<2x32xf32>
    %293 = tpu.matmul %269, %199, %cst_103 {dimension_numbers = #tpu.dot_dimension_numbers<[1], [0], [0], [1], [0, 0, 1, 1], [], []>} : vector<2x32xf32>, vector<32x32xf32>, vector<2x32xf32> -> vector<2x32xf32>
    %294 = arith.addf %292, %293 : vector<2x32xf32>
    %295 = arith.addf %294, %203 : vector<2x32xf32>
    %296 = math.tanh %295 : vector<2x32xf32>
    %297 = vector.shape_cast %296 : vector<2x32xf32> to vector<2x1x32xf32>
    "tpu.trace_start"() <{level = 10 : i32, message = "bqh,bsh->bqs"}> : () -> ()
    %cst_104 = arith.constant dense<0.000000e+00> : vector<2x1x7xf32>
    %298 = tpu.matmul %297, %197, %cst_104 {dimension_numbers = #tpu.dot_dimension_numbers<[2], [2], [1], [1], [0, 0, 0, 1, 1, 1], [0], [0]>} : vector<2x1x32xf32>, vector<2x7x32xf32>, vector<2x1x7xf32> -> vector<2x1x7xf32>
    "tpu.trace_stop"() : () -> ()
    %cst_105 = arith.constant dense<0xFF800000> : vector<2x1xf32>
    %299 = vector.multi_reduction <maximumf>, %298, %cst_105 [2] : vector<2x1x7xf32> to vector<2x1xf32>
    %300 = vector.shape_cast %299 : vector<2x1xf32> to vector<2x1x1xf32>
    %301 = vector.broadcast %300 : vector<2x1x1xf32> to vector<2x1x7xf32>
    %302 = arith.subf %298, %301 : vector<2x1x7xf32>
    %303 = math.exp %302 : vector<2x1x7xf32>
    %cst_106 = arith.constant dense<0.000000e+00> : vector<2x1xf32>
    %304 = vector.multi_reduction <add>, %303, %cst_106 [2] : vector<2x1x7xf32> to vector<2x1xf32>
    %305 = vector.shape_cast %304 : vector<2x1xf32> to vector<2x1x1xf32>
    %306 = vector.broadcast %305 : vector<2x1x1xf32> to vector<2x1x7xf32>
    %307 = arith.divf %303, %306 : vector<2x1x7xf32>
    "tpu.trace_start"() <{level = 10 : i32, message = "bqs,bsh->bqh"}> : () -> ()
    %cst_107 = arith.constant dense<0.000000e+00> : vector<2x1x32xf32>
    %308 = tpu.matmul %307, %197, %cst_107 {dimension_numbers = #tpu.dot_dimension_numbers<[2], [1], [1], [2], [0, 0, 0, 1, 1, 2], [0], [0]>} : vector<2x1x7xf32>, vector<2x7x32xf32>, vector<2x1x32xf32> -> vector<2x1x32xf32>
    "tpu.trace_stop"() : () -> ()
    %309 = vector.shape_cast %308 : vector<2x1x32xf32> to vector<2x32xf32>
    %cst_108 = arith.constant dense<0.000000e+00> : vector<2x1xf32>
    %310 = tpu.matmul %309, %200, %cst_108 {dimension_numbers = #tpu.dot_dimension_numbers<[1], [0], [0], [1], [0, 0, 1, 1], [], []>} : vector<2x32xf32>, vector<32x1xf32>, vector<2x1xf32> -> vector<2x1xf32>
    %311 = arith.addf %310, %206 : vector<2x1xf32>
    %cst_109 = arith.constant 0.000000e+00 : f32
    %312 = vector.broadcast %cst_109 : f32 to vector<2x1xf32>
    %313 = arith.maximumf %311, %312 : vector<2x1xf32>
    %c3_110 = arith.constant 3 : index
    %c0_111 = arith.constant 0 : index
    %c0_112 = arith.constant 0 : index
    %314 = vector.load %arg12[%c3_110, %c0_111, %c0_112] : memref<4x2x1xf32, #tpu.memory_space<vmem>>, vector<1x2x1xf32>
    %315 = vector.shape_cast %314 : vector<1x2x1xf32> to vector<2x1xf32>
    %316 = vector.shape_cast %313 : vector<2x1xf32> to vector<1x2x1xf32>
    tpu.vector_store %arg12[%c3_110, %c0_111, %c0_112], %316 {strides = array<i32>} : memref<4x2x1xf32, #tpu.memory_space<vmem>>, vector<1x2x1xf32>,
    return
  }
  func.func @transform_0(%arg0: i32) -> (i32, i32, i32) {
    %c0_i32 = arith.constant 0 : i32
    %c0_i32_0 = arith.constant 0 : i32
    %c0_i32_1 = arith.constant 0 : i32
    return %c0_i32, %arg0, %c0_i32_0 : i32, i32, i32
  }
  func.func @transform_1(%arg0: i32) -> (i32, i32) {
    %c0_i32 = arith.constant 0 : i32
    %c0_i32_0 = arith.constant 0 : i32
    return %arg0, %c0_i32 : i32, i32
  }
  func.func @transform_2(%arg0: i32) -> (i32, i32) {
    %c0_i32 = arith.constant 0 : i32
    %c0_i32_0 = arith.constant 0 : i32
    return %arg0, %c0_i32 : i32, i32
  }
  func.func @transform_3(%arg0: i32) -> (i32, i32) {
    %c0_i32 = arith.constant 0 : i32
    %c0_i32_0 = arith.constant 0 : i32
    %c0_i32_1 = arith.constant 0 : i32
    return %c0_i32, %c0_i32_0 : i32, i32
  }
  func.func @transform_4(%arg0: i32) -> (i32, i32) {
    %c0_i32 = arith.constant 0 : i32
    %c0_i32_0 = arith.constant 0 : i32
    %c0_i32_1 = arith.constant 0 : i32
    return %c0_i32, %c0_i32_0 : i32, i32
  }
  func.func @transform_5(%arg0: i32) -> (i32, i32) {
    %c0_i32 = arith.constant 0 : i32
    %c0_i32_0 = arith.constant 0 : i32
    %c0_i32_1 = arith.constant 0 : i32
    return %c0_i32, %c0_i32_0 : i32, i32
  }
  func.func @transform_6(%arg0: i32) -> (i32, i32) {
    %c0_i32 = arith.constant 0 : i32
    %c0_i32_0 = arith.constant 0 : i32
    %c0_i32_1 = arith.constant 0 : i32
    return %c0_i32, %c0_i32_0 : i32, i32
  }
  func.func @transform_7(%arg0: i32) -> (i32, i32) {
    %c0_i32 = arith.constant 0 : i32
    %c0_i32_0 = arith.constant 0 : i32
    %c0_i32_1 = arith.constant 0 : i32
    return %c0_i32, %c0_i32_0 : i32, i32
  }
  func.func @transform_8(%arg0: i32) -> (i32, i32) {
    %c0_i32 = arith.constant 0 : i32
    %c0_i32_0 = arith.constant 0 : i32
    %c0_i32_1 = arith.constant 0 : i32
    return %c0_i32, %c0_i32_0 : i32, i32
  }
  func.func @transform_9(%arg0: i32) -> (i32, i32) {
    %c0_i32 = arith.constant 0 : i32
    %c0_i32_0 = arith.constant 0 : i32
    %c0_i32_1 = arith.constant 0 : i32
    return %c0_i32, %c0_i32_0 : i32, i32
  }
  func.func @transform_10(%arg0: i32) -> (i32, i32) {
    %c0_i32 = arith.constant 0 : i32
    %c0_i32_0 = arith.constant 0 : i32
    %c0_i32_1 = arith.constant 0 : i32
    return %c0_i32, %c0_i32_0 : i32, i32
  }
  func.func @transform_11(%arg0: i32) -> (i32, i32, i32) {
    %c0_i32 = arith.constant 0 : i32
    %c0_i32_0 = arith.constant 0 : i32
    %c0_i32_1 = arith.constant 0 : i32
    return %c0_i32, %arg0, %c0_i32_0 : i32, i32, i32
  }
}

</mosaic_0001>

<bundles_post_ra>
// kernel: tpu_custom_call.1
= control target key start
LH: loop header
LB: loop body
LE: loop exit
PB: predicated region body
PF: predicated region fallthrough
CT: control target
= control target key end

     0   :  { %s4134_s0 = inlined_call_operand.vmem [shape: f32[8,2,1], index: 0, kind: input, shape index: {}]   ;;  %s4135_s1 = inlined_call_operand.vmem [shape: f32[2,32], index: 1, kind: input, shape index: {}]   ;;  %s4136_s2 = inlined_call_operand.hbm [shape: f32[2,32], index: 2, kind: input, shape index: {}]   ;;  %s4137_s3 = inlined_call_operand.hbm [shape: f32[1,128], index: 3, kind: input, shape index: {}]   ;;  %s4138_s4 = inlined_call_operand.vmem [shape: f32[32,128], index: 4, kind: input, shape index: {}]   ;;  %s4139_s5 = inlined_call_operand.vmem [shape: f32[1,128], index: 5, kind: input, shape index: {}]   ;;  %s4140_s6 = inlined_call_operand.vmem [shape: f32[1,32], index: 6, kind: input, shape index: {}]   ;;  %s4141_s7 = inlined_call_operand.vmem [shape: f32[32,32], index: 7, kind: input, shape index: {}]   ;;  %s4142_s8 = inlined_call_operand.vmem [shape: f32[1,32], index: 8, kind: input, shape index: {}]   ;;  %s4143_s9 = inlined_call_operand.vmem [shape: f32[32,1], index: 9, kind: input, shape index: {}]   ;;  %s4144_s10 = inlined_call_operand.<no memory space> [shape: f32[1,1], index: 10, kind: input, shape index: {}]   ;;  %s4145_s11 = inlined_call_operand.vmem [shape: f32[4,2,1], index: 11, kind: output, shape index: {}]  }
   0x1   :  { %v16_v0 = vstv %s4144_s10 }
   0x2   :  { %17 = vst [vmem:[#allocation3] sm:$0x1] %v16_v0 }
   0x3   :  { %18 = vsyncpa [#allocation5], 0 }
   0x4   :  { %19 = vsyncpa [#allocation7], 0  ;;  %s3621_s19 = smov [#allocation4]   ;;  %s3622_s21 = smov [#allocation6]  }
   0x5   :  { %s30_s20 = sshll.u32 %s3621_s19, 4  ;;  %s40_s22 = sshll.u32 %s3622_s21, 4  ;;  %s31_s20 = int_to_ptr.vmem [resolvable:$true] %s30_s20  ;;  %s41_s22 = int_to_ptr.vmem [resolvable:$true] %s40_s22 }
   0x6   :  { %s3573_s25 = scalar_lea.hbm %s4136_s2, 32 }
   0x7   :  { %p3574_p0 = scmp.ne.s32.totalorder %s4136_s2, %s3573_s25  ;;  %p3577_p1 = scmp.lt.u32.totalorder %s3573_s25, %s4136_s2 }
   0x9   :  { %p3579_p2 = pnand %p3577_p1, %p3574_p0 }
   0xb   :  { %3582 = shalt.err (!%p3579_p2)
}
   0xc   :  { %s3583_s10 = scalar_lea.vmem %s31_s20, 32  ;;  %p3588_p4 = scmp.lt.s32.totalorder %s31_s20, %s31_s20 }
   0xd   :  { %p3584_p3 = scmp.ne.s32.totalorder %s31_s20, %s3583_s10  ;;  %p3589_p5 = scmp.lt.s32.totalorder %s3583_s10, %s3583_s10 }
   0xf   :  { %p3590_p6 = por %p3589_p5, %p3588_p4 }
  0x11   :  { %p3591_p7 = pnand %p3590_p6, %p3584_p3 }
  0x13   :  { %3594 = shalt.err (!%p3591_p7)
}
  0x14   :  { %33 = dma.hbm_to_vmem [thread:$0]  %s4136_s2, 32, %s31_s20, [#allocation5]  }
  0x15   :  { %s3595_s15 = scalar_lea.hbm %s4137_s3, 16 }
  0x16   :  { %p3596_p8 = scmp.ne.s32.totalorder %s4137_s3, %s3595_s15  ;;  %p3599_p9 = scmp.lt.u32.totalorder %s3595_s15, %s4137_s3 }
  0x18   :  { %p3601_p10 = pnand %p3599_p9, %p3596_p8 }
  0x1a   :  { %3604 = shalt.err (!%p3601_p10)
}
  0x1b   :  { %s3605_s21 = scalar_lea.vmem %s41_s22, 16  ;;  %s3609_s23 = scalar_lea.vmem %s41_s22, 32 }
  0x1c   :  { %p3606_p11 = scmp.ne.s32.totalorder %s41_s22, %s3605_s21  ;;  %p3610_p12 = scmp.lt.s32.totalorder %s41_s22, %s41_s22 }
  0x1d   :  { %p3611_p13 = scmp.lt.s32.totalorder %s3609_s23, %s3605_s21 }
  0x1f   :  { %p3612_p0 = por %p3611_p13, %p3610_p12 }
  0x21   :  { %p3613_p1 = pnand %p3612_p0, %p3606_p11 }
  0x23   :  { %3616 = shalt.err (!%p3613_p1)
}
  0x24   :  { %43 = dma.hbm_to_vmem [thread:$0]  %s4137_s3, 16, %s41_s22, [#allocation7]  }
  0x25   :  { %3617 = dma.done.wait [#allocation5], 32  }
  0x26   :  { %3618 = vsyncadd [#allocation5], 4294967264 }
  0x27   :  { %3619 = dma.done.wait [#allocation7], 16  }
  0x28   :  { %3620 = vsyncadd [#allocation7], 4294967280  ;;  %v3623_v1 = vmov 0.0|0.0   ;;  %vm3624_vm0 = vmmov 0   ;;  %v3625_v2 = vmov 0.0   ;;  %v3626_v3 = vmov 0  }
  0x29   :  { %3374 = vmatprep.subr.bf16.mxu0 %v3623_v1  ;;  %3137 = vmatprep.mubr.msk.f32.mxu0 %vm3624_vm0, %v3625_v2  ;;  %v65_v4 = vld [vmem:[%s4138_s4] sm:$0xff]  ;;  %v66_v5 = vld [vmem:[%s4138_s4 + $0x8] sm:$0xff]  ;;  %v67_v6 = vld [vmem:[%s4138_s4 + $0x10] sm:$0xff]  ;;  %s3627_s12 = smov 32   ;;  %vm91_vm1 = vcmask 261120   ;;  %s3628_s16 = smov 64  }
  0x2a   :  { %3475 = vset.pattern.permute.xlu0 %v3626_v3  ;;  %3380 = vmatprep.subr.bf16.mxu1 %v3623_v1  ;;  %v3734_v7 = vpack.c.bf16 %v66_v5, %v65_v4  ;;  %v68_v8 = vld [vmem:[%s4138_s4 + $0x18] sm:$0xff]  ;;  %v78_v9 = vld [vmem:[%s4134_s0] sm:$0x3]  ;;  %v77_v10 = vld [vmem:[#allocation4] sm:$0x3]  ;;  %vm199_vm2 = vcmask 254976  }
  0x2b   :  { %3148 = vmatprep.mubr.msk.f32.mxu1 %vm3624_vm0, %v3625_v2  ;;  %3476 = vset.pattern.permute.xlu1 %v3626_v3  ;;  %v3743_v11 = vpack.c.bf16 %v68_v8, %v67_v6  ;;  %v76_v12 = vld [vmem:[%s4135_s1] sm:$0x3]  ;;  %v3763_v14 = vld [vmem:[#allocation6] ss:$0 sm:$0xff]  ;;  %v2957_v33 = vld [vmem:[%s4134_s0 + $0x2] sm:$0x3] }
  0x2c   :  { %81 = vperm.xlu0 %3475, %v78_v9   ;;  %3376 = vmatpush3.bf16.msra.mxu0 %v3734_v7  ;;  %v3769_v16 = vld [vmem:[%s4139_s5] ss:$0 sm:$0xff]  ;;  %v2960_v54 = vld [vmem:[%s4134_s0 + $0x4] sm:$0x3]  ;;  %vm1234_vm3 = vcmask 1046528   ;;  %vm1207_vm4 = vcmask 49152  }
  0x2d   :  { %175 = vrot.lane.b32.xlu1 %v77_v10, %s3627_s12  ;;  %3377 = vmatprep.subr.bf16.mxu0 %v3623_v1  ;;  %vm1230_vm5 = vcmask 56320   ;;  %vm1385_vm6 = vcmask 1041409   ;;  %vm1460_vm7 = vcmask 1024  }
  0x2e   :  { %3382 = vmatpush3.bf16.msra.mxu1 %v3734_v7 }
  0x2f   :  { %3383 = vmatprep.subr.bf16.mxu1 %v3623_v1 }
  0x30   :  { %3379 = vmatpush3.bf16.msra.mxu0 %v3743_v11 }
  0x31   :  { %3386 = vmatprep.subr.bf16.mxu0 %v3623_v1 }
  0x32   :  { %3385 = vmatpush3.bf16.msra.mxu1 %v3743_v11 }
  0x33   :  { %3392 = vmatprep.subr.bf16.mxu1 %v3623_v1  ;;  %3138 = vmatmul.mubr.msk.f32.vlgmr.msra.gmra.mrb[0].mxu0 %vm91_vm1, %v76_v12 }
  0x34   :  { %3388 = vmatpush3.bf16.msra.mxu0 %v3734_v7  ;;  %3159 = vmatprep.mubr.msk.f32.mxu0 %vm3624_vm0, %v3625_v2 }
  0x35   :  { %3389 = vmatprep.subr.bf16.mxu0 %v3623_v1 }
  0x38   :  { %3391 = vmatpush3.bf16.msra.mxu0 %v3743_v11 }
  0x39   :  { %3398 = vmatprep.subr.bf16.mxu0 %v3623_v1 }
  0x9f   :  { %v176_v28 = vpop.permute.xlu1 %175 }
  0xab   :  { %v82_v13 = vpop.permute.xlu0 %81 }
  0xac   :  { %v90_v15 = vmul.f32 %v3763_v14, %v82_v13 }
 0x106   :  { %v161_v17 = vpop.f32.mrb[0].mxu0 }
 0x107   :  { %v165_v18 = vadd.f32 %v161_v17, %v90_v15  ;;  %v3139_v19 = vpop.f32.mrb[1].mxu0  ;;  %v2963_v17 = vld [vmem:[%s4134_s0 + $0x6] sm:$0x3] }
 0x109   :  { %v166_v20 = vadd.f32 %v3769_v16, %v165_v18 }
 0x10b   :  { %3477 = vtanh.f32 %v166_v20  ;;  %v2956_v22 = vmul.f32 -1.442695, %v166_v20 }
 0x10d   :  { %3479 = vpow2.f32 %v2956_v22 }
 0x115   :  { %v3478_v21 = vpop.eup %3477 }
 0x116   :  { %180 = vrot.lane.b32.xlu0 %v3478_v21, %s3627_s12 }
 0x117   :  { %v3480_v23 = vpop.eup %3479 }
 0x118   :  { %v170_v24 = vadd.f32 1.0, %v3480_v23 }
 0x11a   :  { %3481 = vrcp.f32 %v170_v24 }
 0x124   :  { %v3482_v25 = vpop.eup %3481 }
 0x125   :  { %v178_v29 = vmul.f32 %v3482_v25, %v176_v28 }
 0x188   :  { %v181_v26 = vpop.permute.xlu0 %180 }
 0x189   :  { %v183_v27 = vmul.f32 %v3482_v25, %v181_v26 }
 0x18b   :  { %185 = vrot.lane.b32.xlu1 %v183_v27, %s3627_s12 }
 0x1fd   :  { %v186_v30 = vpop.permute.xlu1 %185 }
 0x1fe   :  { %v188_v31 = vadd.f32 %v186_v30, %v178_v29 }
 0x200   :  { %3483 = vtanh.f32 %v188_v31 }
 0x20a   :  { %v3484_v32 = vpop.eup %3483 }
 0x20b   :  { %191 = vrot.lane.b32.xlu0 %v3484_v32, %s3627_s12 }
 0x20f   :  { %205 = vperm.xlu0 %3475, %v2957_v33  }
 0x27d   :  { %v192_v34 = vpop.permute.xlu0 %191 }
 0x27e   :  { %v194_v35 = vmul.f32 %v3482_v25, %v192_v34 }
 0x280   :  { %196 = vrot.lane.b32.xlu1 %v194_v35, %s3628_s16 }
 0x28e   :  { %v206_v37 = vpop.permute.xlu0 %205 }
 0x28f   :  { %v208_v38 = vmul.f32 %v3763_v14, %v206_v37 }
 0x2f2   :  { %v197_v36 = vpop.permute.xlu1 %196 }
 0x2f3   :  { %200 = vst.msk [vmem:[#allocation2] sm:$0x3] %vm199_vm2, %v197_v36  ;;  %3149 = vmatmul.mubr.msk.f32.vlgmr.msra.gmra.mrb[0].mxu1 %vm91_vm1, %v197_v36 }
 0x2f4   :  { %3394 = vmatpush3.bf16.msra.mxu1 %v3734_v7  ;;  %3170 = vmatprep.mubr.msk.f32.mxu1 %vm3624_vm0, %v3625_v2 }
 0x2f5   :  { %3395 = vmatprep.subr.bf16.mxu1 %v3623_v1 }
 0x2f8   :  { %3397 = vmatpush3.bf16.msra.mxu1 %v3743_v11 }
 0x2f9   :  { %3404 = vmatprep.subr.bf16.mxu1 %v3623_v1 }
 0x3c6   :  { %v277_v39 = vpop.f32.mrb[0].mxu1 }
 0x3c7   :  { %v281_v40 = vadd.f32 %v277_v39, %v208_v38  ;;  %v3150_v41 = vpop.f32.mrb[1].mxu1  ;;  %v2966_v38 = vld [vmem:[%s4134_s0 + $0x8] sm:$0x3] }
 0x3c9   :  { %v282_v42 = vadd.f32 %v3769_v16, %v281_v40 }
 0x3cb   :  { %3485 = vtanh.f32 %v282_v42  ;;  %v2959_v44 = vmul.f32 -1.442695, %v282_v42 }
 0x3cd   :  { %3487 = vpow2.f32 %v2959_v44 }
 0x3d5   :  { %v3486_v43 = vpop.eup %3485 }
 0x3d6   :  { %292 = vrot.lane.b32.xlu1 %v3486_v43, %s3627_s12 }
 0x3d7   :  { %v3488_v45 = vpop.eup %3487 }
 0x3d8   :  { %v286_v46 = vadd.f32 1.0, %v3488_v45 }
 0x3da   :  { %3489 = vrcp.f32 %v286_v46 }
 0x3e4   :  { %v3490_v47 = vpop.eup %3489 }
 0x3e5   :  { %v290_v50 = vmul.f32 %v3490_v47, %v188_v31 }
 0x448   :  { %v293_v48 = vpop.permute.xlu1 %292 }
 0x449   :  { %v295_v49 = vmul.f32 %v3490_v47, %v293_v48 }
 0x44b   :  { %297 = vrot.lane.b32.xlu0 %v295_v49, %s3627_s12 }
 0x4bd   :  { %v298_v51 = vpop.permute.xlu0 %297 }
 0x4be   :  { %v300_v52 = vadd.f32 %v298_v51, %v290_v50 }
 0x4c0   :  { %3491 = vtanh.f32 %v300_v52 }
 0x4ca   :  { %v3492_v53 = vpop.eup %3491 }
 0x4cb   :  { %303 = vrot.lane.b32.xlu1 %v3492_v53, %s3627_s12 }
 0x4cf   :  { %317 = vperm.xlu1 %3476, %v2960_v54  }
 0x53d   :  { %v304_v55 = vpop.permute.xlu1 %303 }
 0x53e   :  { %v306_v56 = vmul.f32 %v3490_v47, %v304_v55 }
 0x540   :  { %308 = vrot.lane.b32.xlu0 %v306_v56, %s3628_s16 }
 0x54e   :  { %v318_v58 = vpop.permute.xlu1 %317 }
 0x54f   :  { %v320_v59 = vmul.f32 %v3763_v14, %v318_v58 }
 0x5b2   :  { %v309_v57 = vpop.permute.xlu0 %308 }
 0x5b3   :  { %312 = vst.msk [vmem:[#allocation2 + $0x2] sm:$0x3] %vm199_vm2, %v309_v57  ;;  %3160 = vmatmul.mubr.msk.f32.vlgmr.msra.gmra.mrb[2].mxu0 %vm91_vm1, %v309_v57  ;;  %v2969_v57 = vld [vmem:[%s4134_s0 + $0xa] sm:$0x3] }
 0x5b4   :  { %3400 = vmatpush3.bf16.msra.mxu0 %v3734_v7  ;;  %3181 = vmatprep.mubr.msk.f32.mxu0 %vm3624_vm0, %v3625_v2 }
 0x5b5   :  { %3401 = vmatprep.subr.bf16.mxu0 %v3623_v1 }
 0x5b8   :  { %3403 = vmatpush3.bf16.msra.mxu0 %v3743_v11 }
 0x5b9   :  { %3410 = vmatprep.subr.bf16.mxu0 %v3623_v1 }
 0x686   :  { %v389_v60 = vpop.f32.mrb[2].mxu0 }
 0x687   :  { %v393_v61 = vadd.f32 %v389_v60, %v320_v59  ;;  %v3161_v62 = vpop.f32.mrb[3].mxu0 }
 0x689   :  { %v394_v63 = vadd.f32 %v3769_v16, %v393_v61 }
 0x68b   :  { %3493 = vtanh.f32 %v394_v63  ;;  %v2962_v3 = vmul.f32 -1.442695, %v394_v63 }
 0x68d   :  { %3495 = vpow2.f32 %v2962_v3 }
 0x695   :  { %v3494_v0 = vpop.eup %3493 }
 0x696   :  { %404 = vrot.lane.b32.xlu0 %v3494_v0, %s3627_s12 }
 0x697   :  { %v3496_v4 = vpop.eup %3495 }
 0x698   :  { %v398_v5 = vadd.f32 1.0, %v3496_v4 }
 0x69a   :  { %3497 = vrcp.f32 %v398_v5 }
 0x6a4   :  { %v3498_v6 = vpop.eup %3497 }
 0x6a5   :  { %v402_v10 = vmul.f32 %v3498_v6, %v300_v52 }
 0x708   :  { %v405_v8 = vpop.permute.xlu0 %404 }
 0x709   :  { %v407_v9 = vmul.f32 %v3498_v6, %v405_v8 }
 0x70b   :  { %409 = vrot.lane.b32.xlu1 %v407_v9, %s3627_s12 }
 0x77d   :  { %v410_v12 = vpop.permute.xlu1 %409 }
 0x77e   :  { %v412_v13 = vadd.f32 %v410_v12, %v402_v10 }
 0x780   :  { %3499 = vtanh.f32 %v412_v13 }
 0x78a   :  { %v3500_v15 = vpop.eup %3499 }
 0x78b   :  { %415 = vrot.lane.b32.xlu0 %v3500_v15, %s3627_s12 }
 0x78f   :  { %429 = vperm.xlu0 %3475, %v2963_v17  }
 0x7fd   :  { %v416_v18 = vpop.permute.xlu0 %415 }
 0x7fe   :  { %v418_v19 = vmul.f32 %v3498_v6, %v416_v18 }
 0x800   :  { %420 = vrot.lane.b32.xlu1 %v418_v19, %s3628_s16 }
 0x80e   :  { %v430_v21 = vpop.permute.xlu0 %429 }
 0x80f   :  { %v432_v22 = vmul.f32 %v3763_v14, %v430_v21 }
 0x872   :  { %v421_v20 = vpop.permute.xlu1 %420 }
 0x873   :  { %424 = vst.msk [vmem:[#allocation2 + $0x4] sm:$0x3] %vm199_vm2, %v421_v20  ;;  %3171 = vmatmul.mubr.msk.f32.vlgmr.msra.gmra.mrb[2].mxu1 %vm91_vm1, %v421_v20  ;;  %v2972_v20 = vld [vmem:[%s4134_s0 + $0xc] sm:$0x3] }
 0x874   :  { %3406 = vmatpush3.bf16.msra.mxu1 %v3734_v7  ;;  %3192 = vmatprep.mubr.msk.f32.mxu1 %vm3624_vm0, %v3625_v2 }
 0x875   :  { %3407 = vmatprep.subr.bf16.mxu1 %v3623_v1 }
 0x878   :  { %3409 = vmatpush3.bf16.msra.mxu1 %v3743_v11 }
 0x879   :  { %3416 = vmatprep.subr.bf16.mxu1 %v3623_v1 }
 0x946   :  { %v501_v23 = vpop.f32.mrb[2].mxu1 }
 0x947   :  { %v505_v24 = vadd.f32 %v501_v23, %v432_v22  ;;  %v3172_v25 = vpop.f32.mrb[3].mxu1 }
 0x949   :  { %v506_v26 = vadd.f32 %v3769_v16, %v505_v24 }
 0x94b   :  { %3501 = vtanh.f32 %v506_v26  ;;  %v2965_v28 = vmul.f32 -1.442695, %v506_v26 }
 0x94d   :  { %3503 = vpow2.f32 %v2965_v28 }
 0x955   :  { %v3502_v27 = vpop.eup %3501 }
 0x956   :  { %516 = vrot.lane.b32.xlu1 %v3502_v27, %s3627_s12 }
 0x957   :  { %v3504_v29 = vpop.eup %3503 }
 0x958   :  { %v510_v30 = vadd.f32 1.0, %v3504_v29 }
 0x95a   :  { %3505 = vrcp.f32 %v510_v30 }
 0x964   :  { %v3506_v31 = vpop.eup %3505 }
 0x965   :  { %v514_v34 = vmul.f32 %v3506_v31, %v412_v13 }
 0x9c8   :  { %v517_v32 = vpop.permute.xlu1 %516 }
 0x9c9   :  { %v519_v33 = vmul.f32 %v3506_v31, %v517_v32 }
 0x9cb   :  { %521 = vrot.lane.b32.xlu0 %v519_v33, %s3627_s12 }
 0xa3d   :  { %v522_v35 = vpop.permute.xlu0 %521 }
 0xa3e   :  { %v524_v36 = vadd.f32 %v522_v35, %v514_v34 }
 0xa40   :  { %3507 = vtanh.f32 %v524_v36 }
 0xa4a   :  { %v3508_v37 = vpop.eup %3507 }
 0xa4b   :  { %527 = vrot.lane.b32.xlu1 %v3508_v37, %s3627_s12 }
 0xa4f   :  { %541 = vperm.xlu1 %3476, %v2966_v38  }
 0xabd   :  { %v528_v39 = vpop.permute.xlu1 %527 }
 0xabe   :  { %v530_v40 = vmul.f32 %v3506_v31, %v528_v39 }
 0xac0   :  { %532 = vrot.lane.b32.xlu0 %v530_v40, %s3628_s16  ;;  %v923_v40 = vld [vmem:[%s4141_s7] sm:$0xff] }
 0xace   :  { %v542_v42 = vpop.permute.xlu1 %541 }
 0xacf   :  { %v544_v43 = vmul.f32 %v3763_v14, %v542_v42  ;;  %v925_v42 = vld [vmem:[%s4141_s7 + $0x10] sm:$0xff] }
 0xb32   :  { %v533_v41 = vpop.permute.xlu0 %532 }
 0xb33   :  { %536 = vst.msk [vmem:[#allocation2 + $0x6] sm:$0x3] %vm199_vm2, %v533_v41  ;;  %3182 = vmatmul.mubr.msk.f32.vlgmr.msra.gmra.mrb[4].mxu0 %vm91_vm1, %v533_v41  ;;  %v924_v41 = vld [vmem:[%s4141_s7 + $0x8] sm:$0xff] }
 0xb34   :  { %3412 = vmatpush3.bf16.msra.mxu0 %v3734_v7  ;;  %3203 = vmatprep.mubr.msk.f32.mxu0 %vm3624_vm0, %v3625_v2 }
 0xb35   :  { %3413 = vmatprep.subr.bf16.mxu0 %v3623_v1 }
 0xb38   :  { %3415 = vmatpush3.bf16.msra.mxu0 %v3743_v11 }
 0xb39   :  { %3227 = vmatprep.subr.mxu0 %v3625_v2 }
 0xc06   :  { %v613_v44 = vpop.f32.mrb[4].mxu0 }
 0xc07   :  { %v617_v45 = vadd.f32 %v613_v44, %v544_v43  ;;  %v3183_v46 = vpop.f32.mrb[5].mxu0  ;;  %v3881_v43 = vpack.c.bf16 %v924_v41, %v923_v40  ;;  %v926_v44 = vld [vmem:[%s4141_s7 + $0x18] sm:$0xff] }
 0xc09   :  { %v618_v47 = vadd.f32 %v3769_v16, %v617_v45  ;;  %v3887_v45 = vpack.c.bf16 %v926_v44, %v925_v42 }
 0xc0b   :  { %3509 = vtanh.f32 %v618_v47  ;;  %v2968_v7 = vmul.f32 -1.442695, %v618_v47 }
 0xc0d   :  { %3511 = vpow2.f32 %v2968_v7 }
 0xc15   :  { %v3510_v48 = vpop.eup %3509 }
 0xc16   :  { %628 = vrot.lane.b32.xlu0 %v3510_v48, %s3627_s12  ;;  %v3629_v48 = vmov 1983009808  }
 0xc17   :  { %v3512_v49 = vpop.eup %3511  ;;  %v881_v7 = vunpack.c.l.s4 %v3629_v48 }
 0xc18   :  { %v622_v50 = vadd.f32 1.0, %v3512_v49  ;;  %v883_v49 = vlaneseq }
 0xc1a   :  { %3513 = vrcp.f32 %v622_v50  ;;  %v876_v50 = vld [vmem:[#allocation2 + $0x6] sm:$0x3] }
 0xc24   :  { %v3514_v11 = vpop.eup %3513 }
 0xc25   :  { %v626_v53 = vmul.f32 %v3514_v11, %v524_v36 }
 0xc88   :  { %v629_v51 = vpop.permute.xlu0 %628 }
 0xc89   :  { %v631_v52 = vmul.f32 %v3514_v11, %v629_v51  ;;  %v882_v51 = vunpack.c.0.s8 %v881_v7 }
 0xc8b   :  { %633 = vrot.lane.b32.xlu1 %v631_v52, %s3627_s12  ;;  %v884_v52 = vshrl.u32 %v883_v49, 7 }
 0xcfd   :  { %v634_v54 = vpop.permute.xlu1 %633 }
 0xcfe   :  { %v636_v55 = vadd.f32 %v634_v54, %v626_v53  ;;  %v874_v53 = vld [vmem:[#allocation2 + $0x2] sm:$0x3]  ;;  %v875_v54 = vld [vmem:[#allocation2 + $0x4] sm:$0x3] }
 0xd00   :  { %3515 = vtanh.f32 %v636_v55 }
 0xd0a   :  { %v3516_v56 = vpop.eup %3515 }
 0xd0b   :  { %639 = vrot.lane.b32.xlu0 %v3516_v56, %s3627_s12  ;;  %v3630_v56 = vmov 1934713408  }
 0xd0f   :  { %653 = vperm.xlu0 %3475, %v2969_v57   ;;  %v906_v57 = vunpack.c.l.s4 %v3630_v56  ;;  %v929_v56 = vld [vmem:[%s4143_s9 + $0x10] sm:$0xff] }
 0xd7d   :  { %v640_v58 = vpop.permute.xlu0 %639 }
 0xd7e   :  { %v642_v59 = vmul.f32 %v3514_v11, %v640_v58  ;;  %v873_v58 = vld [vmem:[#allocation2] sm:$0x3] }
 0xd80   :  { %644 = vrot.lane.b32.xlu1 %v642_v59, %s3628_s16  ;;  %v885_v59 = vsub.s32 %v882_v51, %v884_v52  ;;  %v927_v51 = vld [vmem:[%s4143_s9] sm:$0xff] }
 0xd8e   :  { %v654_v61 = vpop.permute.xlu0 %653 }
 0xd8f   :  { %v656_v62 = vmul.f32 %v3763_v14, %v654_v61 }
 0xdf2   :  { %v645_v60 = vpop.permute.xlu1 %644 }
 0xdf3   :  { %648 = vst.msk [vmem:[#allocation2 + $0x8] sm:$0x3] %vm199_vm2, %v645_v60  ;;  %3193 = vmatmul.mubr.msk.f32.vlgmr.msra.gmra.mrb[4].mxu1 %vm91_vm1, %v645_v60  ;;  %v879_v60 = vcombine.low %v873_v58, %v875_v54 }
 0xdf4   :  { %3214 = vmatprep.mubr.msk.f32.mxu1 %vm3624_vm0, %v3625_v2  ;;  %3418 = vmatpush3.bf16.msra.mxu1 %v3881_v43 }
 0xdf5   :  { %3419 = vmatprep.subr.bf16.mxu1 %v3623_v1 }
 0xdf8   :  { %3421 = vmatpush3.bf16.msra.mxu1 %v3887_v45 }
 0xdf9   :  { %3217 = vmatprep.subr.mxu1 %v3625_v2 }
 0xec6   :  { %v725_v63 = vpop.f32.mrb[4].mxu1 }
 0xec7   :  { %v729_v0 = vadd.f32 %v725_v63, %v656_v62  ;;  %v3194_v3 = vpop.f32.mrb[5].mxu1  ;;  %v907_v62 = vunpack.c.0.s8 %v906_v57  ;;  %v877_v63 = vld [vmem:[#allocation2 + $0x8] sm:$0x3]  ;;  %v930_v57 = vld [vmem:[%s4143_s9 + $0x18] sm:$0xff] }
 0xec8   :  { %v886_v3 = vrot.slane %v879_v60, %v885_v59  ;;  %v3962_v60 = vpack.c.bf16 %v930_v57, %v929_v56 }
 0xec9   :  { %v730_v4 = vadd.f32 %v3769_v16, %v729_v0 }
 0xecb   :  { %3517 = vtanh.f32 %v730_v4  ;;  %v2971_v6 = vmul.f32 -1.442695, %v730_v4 }
 0xecd   :  { %3519 = vpow2.f32 %v2971_v6 }
 0xed5   :  { %v3518_v5 = vpop.eup %3517 }
 0xed6   :  { %740 = vrot.lane.b32.xlu1 %v3518_v5, %s3627_s12 }
 0xed7   :  { %v3520_v8 = vpop.eup %3519 }
 0xed8   :  { %v734_v9 = vadd.f32 1.0, %v3520_v8  ;;  %v910_v8 = vsub.s32 %v907_v62, %v884_v52 }
 0xeda   :  { %3521 = vrcp.f32 %v734_v9 }
 0xee4   :  { %v3522_v10 = vpop.eup %3521 }
 0xee5   :  { %v738_v15 = vmul.f32 %v3522_v10, %v636_v55  ;;  %v887_v55 = vcombine.low %v874_v53, %v876_v50 }
 0xee7   :  { %v894_v61 = vrot.slane %v887_v55, %v885_v59 }
 0xee9   :  { %v904_v6 = vcombine.low %v886_v3, %v894_v61 }
 0xf48   :  { %v741_v12 = vpop.permute.xlu1 %740 }
 0xf49   :  { %v743_v13 = vmul.f32 %v3522_v10, %v741_v12  ;;  %v911_v12 = vrot.slane %v904_v6, %v910_v8 }
 0xf4b   :  { %745 = vrot.lane.b32.xlu0 %v743_v13, %s3627_s12 }
 0xfbd   :  { %v746_v17 = vpop.permute.xlu0 %745 }
 0xfbe   :  { %v748_v18 = vadd.f32 %v746_v17, %v738_v15 }
 0xfc0   :  { %3523 = vtanh.f32 %v748_v18 }
 0xfca   :  { %v3524_v19 = vpop.eup %3523 }
 0xfcb   :  { %751 = vrot.lane.b32.xlu1 %v3524_v19, %s3627_s12 }
 0xfcf   :  { %765 = vperm.xlu1 %3476, %v2972_v20  }
0x103d   :  { %v752_v21 = vpop.permute.xlu1 %751 }
0x103e   :  { %v754_v22 = vmul.f32 %v3522_v10, %v752_v21  ;;  %v3916_v21 = vld [vmem:[%s4142_s8] ss:$0 sm:$0xff] }
0x1040   :  { %756 = vrot.lane.b32.xlu0 %v754_v22, %s3628_s16 }
0x104e   :  { %v766_v24 = vpop.permute.xlu1 %765 }
0x104f   :  { %v768_v25 = vmul.f32 %v3763_v14, %v766_v24 }
0x10b2   :  { %v757_v23 = vpop.permute.xlu0 %756 }
0x10b3   :  { %760 = vst.msk [vmem:[#allocation2 + $0xa] sm:$0x3] %vm199_vm2, %v757_v23  ;;  %3204 = vmatmul.mubr.msk.f32.vlgmr.msra.gmra.mrb[6].mxu0 %vm91_vm1, %v757_v23 }
0x10b4   :  { %3229 = vmatprep.mubr.msk.f32.mxu0 %vm3624_vm0, %v3625_v2 }
0x10ba   :  { %v903_v9 = vld [vmem:[#allocation2 + $0xa] sm:$0x3] }
0x1186   :  { %v837_v26 = vpop.f32.mrb[6].mxu0 }
0x1187   :  { %v841_v27 = vadd.f32 %v837_v26, %v768_v25  ;;  %v3205_v28 = vpop.f32.mrb[7].mxu0  ;;  %v3631_v26 = vmov 1966171168  }
0x1189   :  { %v842_v29 = vadd.f32 %v3769_v16, %v841_v27  ;;  %v2977_v16 = vld [vmem:[%s4134_s0 + $0xe] sm:$0x3]  ;;  %v1036_v27 = vunpack.c.l.s4 %v3631_v26 }
0x118b   :  { %3525 = vtanh.f32 %v842_v29  ;;  %v2974_v31 = vmul.f32 -1.442695, %v842_v29  ;;  %v1037_v28 = vunpack.c.0.s8 %v1036_v27 }
0x118d   :  { %3527 = vpow2.f32 %v2974_v31  ;;  %v3919_v29 = vsub.s32 %v1037_v28, %v884_v52  ;;  %v928_v52 = vld [vmem:[%s4143_s9 + $0x8] sm:$0xff] }
0x118e   :  { %v3949_v54 = vpack.c.bf16 %v928_v52, %v927_v51 }
0x1195   :  { %v3526_v30 = vpop.eup %3525 }
0x1196   :  { %852 = vrot.lane.b32.xlu0 %v3526_v30, %s3627_s12 }
0x1197   :  { %v3528_v32 = vpop.eup %3527 }
0x1198   :  { %v846_v33 = vadd.f32 1.0, %v3528_v32 }
0x119a   :  { %3529 = vrcp.f32 %v846_v33 }
0x11a4   :  { %v3530_v34 = vpop.eup %3529 }
0x11a5   :  { %v850_v14 = vmul.f32 %v3530_v34, %v748_v18  ;;  %v3910_v18 = vld [vmem:[%s4140_s6] ss:$0 sm:$0xff] }
0x1208   :  { %v853_v35 = vpop.permute.xlu0 %852 }
0x1209   :  { %v855_v36 = vmul.f32 %v3530_v34, %v853_v35 }
0x120b   :  { %857 = vrot.lane.b32.xlu1 %v855_v36, %s3627_s12 }
0x127d   :  { %v858_v37 = vpop.permute.xlu1 %857 }
0x127e   :  { %v860_v38 = vadd.f32 %v858_v37, %v850_v14 }
0x1280   :  { %3531 = vtanh.f32 %v860_v38 }
0x128a   :  { %v3532_v39 = vpop.eup %3531 }
0x128b   :  { %863 = vrot.lane.b32.xlu0 %v3532_v39, %s3627_s12 }
0x128f   :  { %949 = vperm.xlu0 %3475, %v2977_v16  }
0x12fd   :  { %v864_v46 = vpop.permute.xlu0 %863 }
0x12fe   :  { %v866_v47 = vmul.f32 %v3530_v34, %v864_v46 }
0x1300   :  { %868 = vrot.lane.b32.xlu1 %v866_v47, %s3628_s16 }
0x130e   :  { %v950_v19 = vpop.permute.xlu0 %949 }
0x130f   :  { %v958_v20 = vmul.f32 %v3910_v18, %v950_v19 }
0x1372   :  { %v869_v11 = vpop.permute.xlu1 %868 }
0x1373   :  { %872 = vst.msk [vmem:[#allocation2 + $0xc] sm:$0x3] %vm199_vm2, %v869_v11  ;;  %3215 = vmatmul.mubr.msk.f32.vlgmr.msra.gmra.mrb[6].mxu1 %vm91_vm1, %v869_v11 }
0x1374   :  { %3219 = vmatprep.mubr.msk.f32.mxu1 %vm3624_vm0, %v3625_v2 }
0x137a   :  { %v878_v0 = vld [vmem:[#allocation2 + $0xc] sm:$0x3] }
0x137b   :  { %v895_v4 = vcombine.low %v877_v63, %v878_v0 }
0x137d   :  { %v902_v5 = vrot.slane %v895_v4, %v885_v59 }
0x137f   :  { %v912_v10 = vcombine.low %v902_v5, %v903_v9 }
0x1381   :  { %v919_v13 = vrot.slane %v912_v10, %v910_v8  ;;  %v3987_v8 = vld [vmem:[#allocation3] ss:$0 sm:$0xff] }
0x1383   :  { %v3897_v15 = vcombine.low %v911_v12, %v919_v13  ;;  %v3899_v17 = vcombine.high %v911_v12, %v919_v13 }
0x1385   :  { %3218 = vmatpush3.xpose.msk.msra.mxu1 %vm91_vm1, %v3897_v15  ;;  %3228 = vmatpush3.msk.msra.mxu0 %vm1234_vm3, %v3897_v15 }
0x1386   :  { %3222 = vmatprep.subr.mxu1 %v3625_v2  ;;  %3422 = vmatprep.subr.bf16.mxu0 %v3623_v1 }
0x1446   :  { %v1027_v22 = vpop.f32.mrb[6].mxu1 }
0x1447   :  { %v1031_v23 = vadd.f32 %v1027_v22, %v958_v20  ;;  %v3216_v24 = vpop.f32.mrb[7].mxu1 }
0x1449   :  { %v1032_v25 = vadd.f32 %v3916_v21, %v1031_v23 }
0x144b   :  { %3533 = vtanh.f32 %v1032_v25 }
0x1455   :  { %v3921_v30 = vpop.eup %3533 }
0x1456   :  { %v1041_v31 = vrot.slane %v3921_v30, %v3919_v29 }
0x1458   :  { %v1049_v32 = vrot.slane %v1041_v31, %v3919_v29  ;;  %v1042_v33 = vcombine.high %v1041_v31, %v1041_v31 }
0x145a   :  { %3220 = vmatmul.mubr.msk.f32.vlgmr.msra.gmra.mrb[8].mxu1 %vm91_vm1, %v1049_v32  ;;  %v1056_v34 = vrot.slane %v1042_v33, %v3919_v29 }
0x145b   :  { %3223 = vmatpush3.xpose.msk.msra.mxu1 %vm91_vm1, %v3899_v17  ;;  %3224 = vmatprep.mubr.msk.f32.mxu1 %vm3624_vm0, %v3625_v2 }
0x145c   :  { %3232 = vmatprep.subr.mxu1 %v3625_v2 }
0x145e   :  { %3225 = vmatmul.mubr.msk.f32.vlgmr.msra.gmra.mrb[10].mxu1 %vm91_vm1, %v1056_v34 }
0x145f   :  { %3233 = vmatpush3.msk.msra.mxu1 %vm1234_vm3, %v3899_v17  ;;  %3234 = vmatprep.mubr.msk.f32.mxu1 %vm3624_vm0, %v3625_v2 }
0x1460   :  { %3428 = vmatprep.subr.bf16.mxu1 %v3623_v1 }
0x152d   :  { %v1128_v35 = vpop.f32.mrb[8].mxu1 }
0x152e   :  { %v3221_v36 = vpop.f32.mrb[9].mxu1  ;;  %v1208_v14 = vsel %vm1207_vm4, %v1128_v35, -inf }
0x152f   :  { %1209 = vmax.xlane.f32.xlu0 %v1208_v14 }
0x1531   :  { %v1203_v37 = vpop.f32.mrb[10].mxu1 }
0x1532   :  { %v3226_v38 = vpop.f32.mrb[11].mxu1  ;;  %v1211_v39 = vsel %vm1207_vm4, %v1203_v37, -inf }
0x1533   :  { %1212 = vmax.xlane.f32.xlu1 %v1211_v39 }
0x15bc   :  { %v1210_v16 = vpop.xlane.xlu0 %1209 }
0x15bd   :  { %v1214_v40 = vsub.f32 %v1128_v35, %v1210_v16 }
0x15bf   :  { %v1216_v41 = vmul.f32 1.442695, %v1214_v40 }
0x15c0   :  { %v1213_v42 = vpop.xlane.xlu1 %1212 }
0x15c1   :  { %3535 = vpow2.f32 %v1216_v41  ;;  %v1215_v44 = vsub.f32 %v1203_v37, %v1213_v42 }
0x15c3   :  { %v1218_v46 = vmul.f32 1.442695, %v1215_v44 }
0x15c5   :  { %3537 = vpow2.f32 %v1218_v46 }
0x15cb   :  { %v3536_v47 = vpop.eup %3535 }
0x15cc   :  { %v1220_v48 = vsel %vm1207_vm4, %v3536_v47, 0.0 }
0x15cd   :  { %1221 = vadd.xlane.f32.xlu1 %v1220_v48 }
0x15cf   :  { %v3538_v7 = vpop.eup %3537 }
0x15d0   :  { %v1223_v49 = vsel %vm1207_vm4, %v3538_v7, 0.0 }
0x15d1   :  { %1224 = vadd.xlane.f32.xlu0 %v1223_v49 }
0x165a   :  { %v1222_v50 = vpop.xlane.xlu1 %1221 }
0x165b   :  { %3539 = vrcp.f32 %v1222_v50 }
0x165e   :  { %v1225_v11 = vpop.xlane.xlu0 %1224 }
0x165f   :  { %3541 = vrcp.f32 %v1225_v11 }
0x1665   :  { %v3540_v53 = vpop.eup %3539 }
0x1666   :  { %v1227_v55 = vmul.f32 %v3540_v53, %v3536_v47 }
0x1668   :  { %3230 = vmatmul.mubr.msk.f32.vlgmr.msra.gmra.mrb[8].mxu0 %vm1230_vm5, %v1227_v55 }
0x1669   :  { %v3542_v58 = vpop.eup %3541  ;;  %3424 = vmatpush3.bf16.msra.mxu0 %v3949_v54  ;;  %3245 = vmatprep.mubr.msk.f32.mxu0 %vm3624_vm0, %v3625_v2 }
0x166a   :  { %v1229_v59 = vmul.f32 %v3542_v58, %v3538_v7  ;;  %3425 = vmatprep.subr.bf16.mxu0 %v3623_v1 }
0x166c   :  { %3235 = vmatmul.mubr.msk.f32.vlgmr.msra.gmra.mrb[12].mxu1 %vm1230_vm5, %v1229_v59 }
0x166d   :  { %3430 = vmatpush3.bf16.msra.mxu1 %v3881_v43  ;;  %3256 = vmatprep.mubr.msk.f32.mxu1 %vm3624_vm0, %v3625_v2 }
0x166e   :  { %3431 = vmatprep.subr.bf16.mxu1 %v3623_v1  ;;  %3427 = vmatpush3.bf16.msra.mxu0 %v3962_v60 }
0x166f   :  { %3259 = vmatprep.subr.mxu0 %v3625_v2 }
0x1671   :  { %3433 = vmatpush3.bf16.msra.mxu1 %v3887_v45 }
0x1672   :  { %3264 = vmatprep.subr.mxu1 %v3625_v2 }
0x1674   :  { %3257 = vmatmul.mubr.msk.f32.vlgmr.msra.gmra.mrb[14].mxu1 %vm91_vm1, %v3921_v30 }
0x1675   :  { %3266 = vmatprep.mubr.msk.f32.mxu1 %vm3624_vm0, %v3625_v2 }
0x167a   :  { %3265 = vmatpush3.xpose.msk.msra.mxu1 %vm91_vm1, %v3899_v17 }
0x167b   :  { %3274 = vmatprep.subr.mxu1 %v3625_v2 }
0x173b   :  { %v1303_v61 = vpop.f32.mrb[8].mxu0 }
0x173c   :  { %v3231_v62 = vpop.f32.mrb[9].mxu0 }
0x173f   :  { %v1378_v63 = vpop.f32.mrb[12].mxu1 }
0x1740   :  { %v1384_v0 = vrot.slane %v1378_v63, 7  ;;  %v3236_v3 = vpop.f32.mrb[13].mxu1 }
0x1742   :  { %v1386_v4 = vsel %vm1385_vm6, %v1384_v0, %v1303_v61 }
0x1743   :  { %3246 = vmatmul.mubr.msk.f32.vlgmr.msra.gmra.mrb[10].mxu0 %vm91_vm1, %v1386_v4 }
0x1744   :  { %3260 = vmatpush3.xpose.msk.msra.mxu0 %vm91_vm1, %v3897_v15  ;;  %3261 = vmatprep.mubr.msk.f32.mxu0 %vm3624_vm0, %v3625_v2 }
0x1745   :  { %3269 = vmatprep.subr.mxu0 %v3625_v2 }
0x1747   :  { %v1536_v5 = vpop.f32.mrb[14].mxu1 }
0x1748   :  { %v3258_v6 = vpop.f32.mrb[15].mxu1 }
0x1816   :  { %v1455_v9 = vpop.f32.mrb[10].mxu0 }
0x1817   :  { %v1456_v10 = vadd.f32 %v3987_v8, %v1455_v9  ;;  %v3247_v12 = vpop.f32.mrb[11].mxu0 }
0x1819   :  { %v1459_v13 = vmax.f32 %v1456_v10, 0.0 }
0x181b   :  { %1461 = vst.msk [vmem:[%s4145_s11] sm:$0x3] %vm1460_vm7, %v1459_v13  ;;  %1464 = vperm.xlu0 %3475, %v1459_v13  }
0x189a   :  { %v1465_v19 = vpop.permute.xlu0 %1464 }
0x189b   :  { %v1467_v20 = vmul.f32 %v3910_v18, %v1465_v19 }
0x189d   :  { %v1540_v22 = vadd.f32 %v1536_v5, %v1467_v20 }
0x189f   :  { %v1541_v23 = vadd.f32 %v3916_v21, %v1540_v22 }
0x18a1   :  { %3543 = vtanh.f32 %v1541_v23 }
0x18ab   :  { %v3544_v24 = vpop.eup %3543 }
0x18ac   :  { %v1550_v25 = vrot.slane %v3544_v24, %v3919_v29 }
0x18ae   :  { %v1558_v26 = vrot.slane %v1550_v25, %v3919_v29  ;;  %v1551_v27 = vcombine.high %v1550_v25, %v1550_v25 }
0x18b0   :  { %3262 = vmatmul.mubr.msk.f32.vlgmr.msra.gmra.mrb[12].mxu0 %vm91_vm1, %v1558_v26  ;;  %v1565_v28 = vrot.slane %v1551_v27, %v3919_v29 }
0x18b1   :  { %3270 = vmatpush3.msk.msra.mxu0 %vm1234_vm3, %v3897_v15  ;;  %3271 = vmatprep.mubr.msk.f32.mxu0 %vm3624_vm0, %v3625_v2 }
0x18b2   :  { %3267 = vmatmul.mubr.msk.f32.vlgmr.msra.gmra.mrb[16].mxu1 %vm91_vm1, %v1565_v28  ;;  %3434 = vmatprep.subr.bf16.mxu0 %v3623_v1 }
0x18b3   :  { %3275 = vmatpush3.msk.msra.mxu1 %vm1234_vm3, %v3899_v17  ;;  %3276 = vmatprep.mubr.msk.f32.mxu1 %vm3624_vm0, %v3625_v2 }
0x18b4   :  { %3440 = vmatprep.subr.bf16.mxu1 %v3623_v1 }
0x1983   :  { %v1634_v30 = vpop.f32.mrb[12].mxu0 }
0x1984   :  { %v3263_v31 = vpop.f32.mrb[13].mxu0  ;;  %v1710_v35 = vsel %vm1207_vm4, %v1634_v30, -inf }
0x1985   :  { %v1706_v32 = vpop.f32.mrb[16].mxu1 }
0x1986   :  { %v3268_v33 = vpop.f32.mrb[17].mxu1  ;;  %v1713_v34 = vsel %vm1207_vm4, %v1706_v32, -inf }
0x1987   :  { %1714 = vmax.xlane.f32.xlu1 %v1713_v34 }
0x198b   :  { %1711 = vmax.xlane.f32.xlu1 %v1710_v35 }
0x1a14   :  { %v1715_v36 = vpop.xlane.xlu1 %1714 }
0x1a15   :  { %v1717_v14 = vsub.f32 %v1706_v32, %v1715_v36 }
0x1a17   :  { %v1720_v37 = vmul.f32 1.442695, %v1717_v14 }
0x1a18   :  { %v1712_v38 = vpop.xlane.xlu1 %1711 }
0x1a19   :  { %3545 = vpow2.f32 %v1720_v37  ;;  %v1716_v39 = vsub.f32 %v1634_v30, %v1712_v38 }
0x1a1b   :  { %v1718_v16 = vmul.f32 1.442695, %v1716_v39 }
0x1a1d   :  { %3547 = vpow2.f32 %v1718_v16 }
0x1a23   :  { %v3546_v40 = vpop.eup %3545 }
0x1a24   :  { %v1725_v41 = vsel %vm1207_vm4, %v3546_v40, 0.0 }
0x1a25   :  { %1726 = vadd.xlane.f32.xlu1 %v1725_v41 }
0x1a27   :  { %v3548_v42 = vpop.eup %3547 }
0x1a28   :  { %v1722_v44 = vsel %vm1207_vm4, %v3548_v42, 0.0 }
0x1a29   :  { %1723 = vadd.xlane.f32.xlu1 %v1722_v44 }
0x1ab2   :  { %v1727_v46 = vpop.xlane.xlu1 %1726 }
0x1ab3   :  { %3549 = vrcp.f32 %v1727_v46 }
0x1ab6   :  { %v1724_v47 = vpop.xlane.xlu1 %1723 }
0x1ab7   :  { %3551 = vrcp.f32 %v1724_v47 }
0x1abd   :  { %v3550_v48 = vpop.eup %3549 }
0x1abe   :  { %v1731_v7 = vmul.f32 %v3550_v48, %v3546_v40 }
0x1ac0   :  { %3277 = vmatmul.mubr.msk.f32.vlgmr.msra.gmra.mrb[18].mxu1 %vm1230_vm5, %v1731_v7 }
0x1ac1   :  { %v3552_v49 = vpop.eup %3551  ;;  %3442 = vmatpush3.bf16.msra.mxu1 %v3881_v43  ;;  %3298 = vmatprep.mubr.msk.f32.mxu1 %vm3624_vm0, %v3625_v2 }
0x1ac2   :  { %v1729_v50 = vmul.f32 %v3552_v49, %v3548_v42  ;;  %3443 = vmatprep.subr.bf16.mxu1 %v3623_v1 }
0x1ac4   :  { %3272 = vmatmul.mubr.msk.f32.vlgmr.msra.gmra.mrb[14].mxu0 %vm1230_vm5, %v1729_v50 }
0x1ac5   :  { %3445 = vmatpush3.bf16.msra.mxu1 %v3887_v45  ;;  %3436 = vmatpush3.bf16.msra.mxu0 %v3949_v54 }
0x1ac6   :  { %3306 = vmatprep.subr.mxu1 %v3625_v2  ;;  %3437 = vmatprep.subr.bf16.mxu0 %v3623_v1 }
0x1ac7   :  { %3287 = vmatprep.mubr.msk.f32.mxu0 %vm3624_vm0, %v3625_v2 }
0x1ac8   :  { %3299 = vmatmul.mubr.msk.f32.vlgmr.msra.gmra.mrb[20].mxu1 %vm91_vm1, %v3544_v24 }
0x1ac9   :  { %3439 = vmatpush3.bf16.msra.mxu0 %v3962_v60  ;;  %3308 = vmatprep.mubr.msk.f32.mxu1 %vm3624_vm0, %v3625_v2 }
0x1aca   :  { %3301 = vmatprep.subr.mxu0 %v3625_v2 }
0x1ace   :  { %3307 = vmatpush3.xpose.msk.msra.mxu1 %vm91_vm1, %v3899_v17 }
0x1acf   :  { %3316 = vmatprep.subr.mxu1 %v3625_v2 }
0x1b93   :  { %v1874_v11 = vpop.f32.mrb[18].mxu1 }
0x1b94   :  { %v3278_v51 = vpop.f32.mrb[19].mxu1  ;;  %v1880_v52 = vrot.slane %v1874_v11, 7 }
0x1b97   :  { %v1801_v53 = vpop.f32.mrb[14].mxu0 }
0x1b98   :  { %v1881_v55 = vsel %vm1385_vm6, %v1880_v52, %v1801_v53  ;;  %v3273_v56 = vpop.f32.mrb[15].mxu0 }
0x1b99   :  { %3288 = vmatmul.mubr.msk.f32.vlgmr.msra.gmra.mrb[16].mxu0 %vm91_vm1, %v1881_v55 }
0x1b9a   :  { %3302 = vmatpush3.xpose.msk.msra.mxu0 %vm91_vm1, %v3897_v15  ;;  %3303 = vmatprep.mubr.msk.f32.mxu0 %vm3624_vm0, %v3625_v2 }
0x1b9b   :  { %v2031_v57 = vpop.f32.mrb[20].mxu1  ;;  %3311 = vmatprep.subr.mxu0 %v3625_v2 }
0x1b9c   :  { %v3300_v58 = vpop.f32.mrb[21].mxu1 }
0x1c6c   :  { %v1950_v59 = vpop.f32.mrb[16].mxu0 }
0x1c6d   :  { %v1951_v61 = vadd.f32 %v3987_v8, %v1950_v59  ;;  %v3289_v62 = vpop.f32.mrb[17].mxu0 }
0x1c6f   :  { %v1954_v63 = vmax.f32 %v1951_v61, 0.0 }
0x1c71   :  { %2999 = vst.msk [vmem:[%s4145_s11 + $0x2] sm:$0x3] %vm1460_vm7, %v1954_v63  ;;  %1959 = vperm.xlu1 %3476, %v1954_v63  }
0x1cf0   :  { %v1960_v0 = vpop.permute.xlu1 %1959 }
0x1cf1   :  { %v1962_v3 = vmul.f32 %v3910_v18, %v1960_v0 }
0x1cf3   :  { %v2035_v4 = vadd.f32 %v2031_v57, %v1962_v3 }
0x1cf5   :  { %v2036_v5 = vadd.f32 %v3916_v21, %v2035_v4 }
0x1cf7   :  { %3553 = vtanh.f32 %v2036_v5 }
0x1d01   :  { %v3554_v6 = vpop.eup %3553 }
0x1d02   :  { %v2045_v9 = vrot.slane %v3554_v6, %v3919_v29 }
0x1d04   :  { %v2053_v10 = vrot.slane %v2045_v9, %v3919_v29  ;;  %v2046_v12 = vcombine.high %v2045_v9, %v2045_v9 }
0x1d06   :  { %3304 = vmatmul.mubr.msk.f32.vlgmr.msra.gmra.mrb[18].mxu0 %vm91_vm1, %v2053_v10  ;;  %v2060_v13 = vrot.slane %v2046_v12, %v3919_v29 }
0x1d07   :  { %3312 = vmatpush3.msk.msra.mxu0 %vm1234_vm3, %v3897_v15  ;;  %3313 = vmatprep.mubr.msk.f32.mxu0 %vm3624_vm0, %v3625_v2 }
0x1d08   :  { %3309 = vmatmul.mubr.msk.f32.vlgmr.msra.gmra.mrb[22].mxu1 %vm91_vm1, %v2060_v13  ;;  %3446 = vmatprep.subr.bf16.mxu0 %v3623_v1 }
0x1d09   :  { %3317 = vmatpush3.msk.msra.mxu1 %vm1234_vm3, %v3899_v17  ;;  %3318 = vmatprep.mubr.msk.f32.mxu1 %vm3624_vm0, %v3625_v2 }
0x1d0a   :  { %3452 = vmatprep.subr.bf16.mxu1 %v3623_v1 }
0x1dd9   :  { %v2129_v19 = vpop.f32.mrb[18].mxu0 }
0x1dda   :  { %v3305_v20 = vpop.f32.mrb[19].mxu0  ;;  %v2205_v22 = vsel %vm1207_vm4, %v2129_v19, -inf }
0x1ddb   :  { %2206 = vmax.xlane.f32.xlu1 %v2205_v22  ;;  %v2201_v23 = vpop.f32.mrb[22].mxu1 }
0x1ddc   :  { %v3310_v24 = vpop.f32.mrb[23].mxu1  ;;  %v2208_v25 = vsel %vm1207_vm4, %v2201_v23, -inf }
0x1ddd   :  { %2209 = vmax.xlane.f32.xlu0 %v2208_v25 }
0x1e68   :  { %v2207_v26 = vpop.xlane.xlu1 %2206 }
0x1e69   :  { %v2211_v27 = vsub.f32 %v2129_v19, %v2207_v26 }
0x1e6a   :  { %v2210_v28 = vpop.xlane.xlu0 %2209 }
0x1e6b   :  { %v2212_v30 = vsub.f32 %v2201_v23, %v2210_v28  ;;  %v2213_v31 = vmul.f32 1.442695, %v2211_v27 }
0x1e6d   :  { %v2215_v32 = vmul.f32 1.442695, %v2212_v30 }
0x1e6f   :  { %3555 = vpow2.f32 %v2215_v32 }
0x1e70   :  { %3557 = vpow2.f32 %v2213_v31 }
0x1e79   :  { %v3556_v33 = vpop.eup %3555 }
0x1e7a   :  { %v2220_v34 = vsel %vm1207_vm4, %v3556_v33, 0.0  ;;  %v3558_v35 = vpop.eup %3557 }
0x1e7b   :  { %2221 = vadd.xlane.f32.xlu0 %v2220_v34  ;;  %v2217_v36 = vsel %vm1207_vm4, %v3558_v35, 0.0 }
0x1e7f   :  { %2218 = vadd.xlane.f32.xlu0 %v2217_v36 }
0x1f08   :  { %v2222_v14 = vpop.xlane.xlu0 %2221 }
0x1f09   :  { %3559 = vrcp.f32 %v2222_v14 }
0x1f0c   :  { %v2219_v37 = vpop.xlane.xlu0 %2218 }
0x1f0d   :  { %3561 = vrcp.f32 %v2219_v37 }
0x1f13   :  { %v3560_v38 = vpop.eup %3559 }
0x1f14   :  { %v2226_v39 = vmul.f32 %v3560_v38, %v3556_v33 }
0x1f16   :  { %3319 = vmatmul.mubr.msk.f32.vlgmr.msra.gmra.mrb[24].mxu1 %vm1230_vm5, %v2226_v39 }
0x1f17   :  { %v3562_v16 = vpop.eup %3561  ;;  %3454 = vmatpush3.bf16.msra.mxu1 %v3881_v43  ;;  %3340 = vmatprep.mubr.msk.f32.mxu1 %vm3624_vm0, %v3625_v2 }
0x1f18   :  { %v2224_v40 = vmul.f32 %v3562_v16, %v3558_v35  ;;  %3455 = vmatprep.subr.bf16.mxu1 %v3623_v1 }
0x1f1a   :  { %3314 = vmatmul.mubr.msk.f32.vlgmr.msra.gmra.mrb[20].mxu0 %vm1230_vm5, %v2224_v40 }
0x1f1b   :  { %3457 = vmatpush3.bf16.msra.mxu1 %v3887_v45  ;;  %3448 = vmatpush3.bf16.msra.mxu0 %v3949_v54 }
0x1f1c   :  { %3348 = vmatprep.subr.mxu1 %v3625_v2  ;;  %3449 = vmatprep.subr.bf16.mxu0 %v3623_v1 }
0x1f1d   :  { %3329 = vmatprep.mubr.msk.f32.mxu0 %vm3624_vm0, %v3625_v2 }
0x1f1e   :  { %3341 = vmatmul.mubr.msk.f32.vlgmr.msra.gmra.mrb[26].mxu1 %vm91_vm1, %v3554_v6 }
0x1f1f   :  { %3451 = vmatpush3.bf16.msra.mxu0 %v3962_v60  ;;  %3350 = vmatprep.mubr.msk.f32.mxu1 %vm3624_vm0, %v3625_v2 }
0x1f20   :  { %3343 = vmatprep.subr.mxu0 %v3625_v2 }
0x1f24   :  { %3349 = vmatpush3.xpose.msk.msra.mxu1 %vm91_vm1, %v3899_v17 }
0x1f25   :  { %3358 = vmatprep.subr.mxu1 %v3625_v2 }
0x1fe9   :  { %v2369_v43 = vpop.f32.mrb[24].mxu1 }
0x1fea   :  { %v3320_v45 = vpop.f32.mrb[25].mxu1  ;;  %v2375_v41 = vrot.slane %v2369_v43, 7 }
0x1fed   :  { %v2296_v42 = vpop.f32.mrb[20].mxu0 }
0x1fee   :  { %v2376_v44 = vsel %vm1385_vm6, %v2375_v41, %v2296_v42  ;;  %v3315_v46 = vpop.f32.mrb[21].mxu0 }
0x1fef   :  { %3330 = vmatmul.mubr.msk.f32.vlgmr.msra.gmra.mrb[22].mxu0 %vm91_vm1, %v2376_v44 }
0x1ff0   :  { %3344 = vmatpush3.xpose.msk.msra.mxu0 %vm91_vm1, %v3897_v15  ;;  %3345 = vmatprep.mubr.msk.f32.mxu0 %vm3624_vm0, %v3625_v2 }
0x1ff1   :  { %v2526_v47 = vpop.f32.mrb[26].mxu1  ;;  %3353 = vmatprep.subr.mxu0 %v3625_v2 }
0x1ff2   :  { %v3342_v48 = vpop.f32.mrb[27].mxu1 }
0x20c2   :  { %v2445_v7 = vpop.f32.mrb[22].mxu0 }
0x20c3   :  { %v2446_v49 = vadd.f32 %v3987_v8, %v2445_v7  ;;  %v3331_v50 = vpop.f32.mrb[23].mxu0 }
0x20c5   :  { %v2449_v11 = vmax.f32 %v2446_v49, 0.0 }
0x20c7   :  { %3010 = vst.msk [vmem:[%s4145_s11 + $0x4] sm:$0x3] %vm1460_vm7, %v2449_v11  ;;  %2454 = vperm.xlu0 %3475, %v2449_v11  }
0x2146   :  { %v2455_v51 = vpop.permute.xlu0 %2454 }
0x2147   :  { %v2457_v52 = vmul.f32 %v3910_v18, %v2455_v51 }
0x2149   :  { %v2530_v53 = vadd.f32 %v2526_v47, %v2457_v52 }
0x214b   :  { %v2531_v55 = vadd.f32 %v3916_v21, %v2530_v53 }
0x214d   :  { %3563 = vtanh.f32 %v2531_v55 }
0x2157   :  { %v3564_v56 = vpop.eup %3563 }
0x2158   :  { %v2540_v57 = vrot.slane %v3564_v56, %v3919_v29 }
0x215a   :  { %v2548_v58 = vrot.slane %v2540_v57, %v3919_v29  ;;  %v2541_v59 = vcombine.high %v2540_v57, %v2540_v57 }
0x215c   :  { %3346 = vmatmul.mubr.msk.f32.vlgmr.msra.gmra.mrb[24].mxu0 %vm91_vm1, %v2548_v58  ;;  %v2555_v61 = vrot.slane %v2541_v59, %v3919_v29 }
0x215d   :  { %3354 = vmatpush3.msk.msra.mxu0 %vm1234_vm3, %v3897_v15  ;;  %3355 = vmatprep.mubr.msk.f32.mxu0 %vm3624_vm0, %v3625_v2 }
0x215e   :  { %3351 = vmatmul.mubr.msk.f32.vlgmr.msra.gmra.mrb[28].mxu1 %vm91_vm1, %v2555_v61  ;;  %3458 = vmatprep.subr.bf16.mxu0 %v3623_v1 }
0x215f   :  { %3359 = vmatpush3.msk.msra.mxu1 %vm1234_vm3, %v3899_v17  ;;  %3360 = vmatprep.mubr.msk.f32.mxu1 %vm3624_vm0, %v3625_v2 }
0x222f   :  { %v2624_v18 = vpop.f32.mrb[24].mxu0 }
0x2230   :  { %v3347_v21 = vpop.f32.mrb[25].mxu0  ;;  %v2700_v15 = vsel %vm1207_vm4, %v2624_v18, -inf }
0x2231   :  { %v2696_v62 = vpop.f32.mrb[28].mxu1 }
0x2232   :  { %v3352_v29 = vpop.f32.mrb[29].mxu1  ;;  %v2703_v63 = vsel %vm1207_vm4, %v2696_v62, -inf }
0x2233   :  { %2704 = vmax.xlane.f32.xlu1 %v2703_v63 }
0x2237   :  { %2701 = vmax.xlane.f32.xlu1 %v2700_v15 }
0x22c0   :  { %v2705_v0 = vpop.xlane.xlu1 %2704 }
0x22c1   :  { %v2707_v3 = vsub.f32 %v2696_v62, %v2705_v0 }
0x22c3   :  { %v2710_v4 = vmul.f32 1.442695, %v2707_v3 }
0x22c4   :  { %v2702_v5 = vpop.xlane.xlu1 %2701 }
0x22c5   :  { %3565 = vpow2.f32 %v2710_v4  ;;  %v2706_v6 = vsub.f32 %v2624_v18, %v2702_v5 }
0x22c7   :  { %v2708_v17 = vmul.f32 1.442695, %v2706_v6 }
0x22c9   :  { %3567 = vpow2.f32 %v2708_v17 }
0x22cf   :  { %v3566_v9 = vpop.eup %3565 }
0x22d0   :  { %v2715_v10 = vsel %vm1207_vm4, %v3566_v9, 0.0 }
0x22d1   :  { %2716 = vadd.xlane.f32.xlu1 %v2715_v10 }
0x22d3   :  { %v3568_v12 = vpop.eup %3567 }
0x22d4   :  { %v2712_v13 = vsel %vm1207_vm4, %v3568_v12, 0.0 }
0x22d5   :  { %2713 = vadd.xlane.f32.xlu1 %v2712_v13 }
0x235e   :  { %v2717_v19 = vpop.xlane.xlu1 %2716 }
0x235f   :  { %3569 = vrcp.f32 %v2717_v19 }
0x2362   :  { %v2714_v20 = vpop.xlane.xlu1 %2713 }
0x2363   :  { %3571 = vrcp.f32 %v2714_v20 }
0x2369   :  { %v3570_v22 = vpop.eup %3569 }
0x236a   :  { %v2721_v23 = vmul.f32 %v3570_v22, %v3566_v9 }
0x236c   :  { %3361 = vmatmul.mubr.msk.f32.vlgmr.msra.gmra.mrb[30].mxu1 %vm1230_vm5, %v2721_v23 }
0x236d   :  { %v3572_v24 = vpop.eup %3571 }
0x236e   :  { %v2719_v25 = vmul.f32 %v3572_v24, %v3568_v12 }
0x2370   :  { %3356 = vmatmul.mubr.msk.f32.vlgmr.msra.gmra.mrb[26].mxu0 %vm1230_vm5, %v2719_v25 }
0x2371   :  { %3460 = vmatpush3.bf16.msra.mxu0 %v3949_v54  ;;  %3371 = vmatprep.mubr.msk.f32.mxu0 %vm3624_vm0, %v3625_v2 }
0x2372   :  { %3461 = vmatprep.subr.bf16.mxu0 %v3623_v1 }
0x2375   :  { %3463 = vmatpush3.bf16.msra.mxu0 %v3962_v60 }
0x243f   :  { %v2864_v26 = vpop.f32.mrb[30].mxu1 }
0x2440   :  { %v3362_v27 = vpop.f32.mrb[31].mxu1  ;;  %v2870_v28 = vrot.slane %v2864_v26, 7 }
0x2443   :  { %v2791_v30 = vpop.f32.mrb[26].mxu0 }
0x2444   :  { %v2871_v31 = vsel %vm1385_vm6, %v2870_v28, %v2791_v30  ;;  %v3357_v32 = vpop.f32.mrb[27].mxu0 }
0x2445   :  { %3372 = vmatmul.mubr.msk.f32.vlgmr.msra.gmra.mrb[28].mxu0 %vm91_vm1, %v2871_v31 }
0x2518   :  { %v2940_v33 = vpop.f32.mrb[28].mxu0 }
0x2519   :  { %v2941_v34 = vadd.f32 %v3987_v8, %v2940_v33  ;;  %v3373_v54 = vpop.f32.mrb[29].mxu0 }
0x251b   :  { %v2944_v35 = vmax.f32 %v2941_v34, 0.0 }
0x251d   :  { %3021 = vst.msk [vmem:[%s4145_s11 + $0x6] sm:$0x3] %vm1460_vm7, %v2944_v35 }
0x251e   :  { %2951 = vsyncpa [#allocation5], 1 }
0x251f   :  { %2952 = vsyncpa [#allocation7], 1 }

</bundles_post_ra>
